<compile_context>
chip_gen: v6e
topology: v6e:2x2x1
jax: 0.10.0
libtpu: 0.0.40
codegen_flags: <defaults>
</compile_context>

<pallas_src>
import math

import jax
import jax.numpy as jnp
import numpy as np
from jax.experimental import pallas as pl
from jax.experimental.pallas import tpu as pltpu


def _make_bias_kernel(tile_i, j, num_heads, scale, causal, num_buckets, max_distance):
    """Kernel computing one (num_heads, tile_i, j) tile of scale * Emb(bucket)."""

    def kernel(w_ref, o_ref):
        # Row offset of this tile along the query axis.
        row0 = pl.program_id(0) * tile_i

        # rel_pos[q, k] = k - q  ;  n = -rel_pos = q - k
        q_idx = row0 + jax.lax.broadcasted_iota(jnp.int32, (tile_i, j), 0)
        k_idx = jax.lax.broadcasted_iota(jnp.int32, (tile_i, j), 1)
        n = q_idx - k_idx

        nb = num_buckets
        ret = jnp.zeros((tile_i, j), jnp.int32)
        if not causal:
            nb = nb // 2
            ret = ret + (n < 0).astype(jnp.int32) * nb
            n = jnp.abs(n)
        else:
            n = jnp.maximum(n, 0)

        max_exact = nb // 2
        is_small = n < max_exact
        # guard log(0): those entries are masked by is_small anyway
        n_f = jnp.maximum(n.astype(jnp.float32), 1.0)
        val_if_large = max_exact + (
            jnp.log(n_f / max_exact)
            / math.log(max_distance / max_exact)
            * (nb - max_exact)
        ).astype(jnp.int32)  # trunc-toward-zero, same as torch .long()
        val_if_large = jnp.minimum(val_if_large, nb - 1)
        bucket = ret + jnp.where(is_small, n, val_if_large)  # (tile_i, j) int32

        # Embedding lookup as a per-bucket select-accumulate (pure VPU work):
        # one compare per bucket (shared across heads), one select per
        # (bucket, head). Weight scalars come from SMEM; scale folded in.
        accs = [jnp.zeros((tile_i, j), jnp.float32) for _ in range(num_heads)]
        for b in range(num_buckets):
            eq = bucket == b
            for h in range(num_heads):
                accs[h] = jnp.where(eq, w_ref[b, h] * scale, accs[h])
        for h in range(num_heads):
            o_ref[h, :, :] = accs[h]

    return kernel


def _choose_tile_i(i, j, num_heads):
    """Sublane-aligned row tile; keeps the per-step output block modest."""
    if i % 8 != 0:
        return i  # full-extent block satisfies the (8, 128) rule
    # Keep the (H, tile_i, j) f32 output block <= ~4 MiB so double-buffered
    # writeback + accumulators fit comfortably in scoped VMEM (v7x: 32 MiB
    # default scoped / 64 MiB physical).
    budget = 4 * 1024 * 1024
    max_rows = max(8, budget // max(1, num_heads * j * 4))
    t = max(8, min(i, (max_rows // 8) * 8))
    while i % t != 0:
        t -= 8
    return t


def t5_relative_position_bias(
    x, weight, scale, causal=False, num_buckets=32, max_distance=128, tile_i=None
):
    """Pallas equivalent of T5RelativePositionBias.forward(x).

    Returns bias of shape (1, num_heads, 1, i, j), float32.
    """
    i, j = int(x.shape[-2]), int(x.shape[-1])
    num_buckets = int(num_buckets)
    num_heads = int(weight.shape[1])
    if tile_i is None:
        tile_i = _choose_tile_i(i, j, num_heads)
    tile_i = int(tile_i)

    kernel = _make_bias_kernel(
        tile_i, j, num_heads, float(scale), bool(causal), num_buckets, int(max_distance)
    )

    out = pl.pallas_call(
        kernel,
        out_shape=jax.ShapeDtypeStruct((num_heads, i, j), jnp.float32),
        grid=(pl.cdiv(i, tile_i),),
        in_specs=[
            # Tiny (num_buckets, num_heads) table: keep it in SMEM and read
            # scalars per (bucket, head); no VMEM tile, no transpose.
            pl.BlockSpec(memory_space=pltpu.MemorySpace.SMEM),
        ],
        out_specs=pl.BlockSpec((num_heads, tile_i, j), lambda g: (0, g, 0)),
        compiler_params=pltpu.CompilerParams(
            dimension_semantics=("parallel",),
        ),
    )(weight)

    return out.reshape(1, num_heads, 1, i, j)


def _reference(x, weight, scale, causal, num_buckets, max_distance):
    """Pure-JAX reference mirroring the PyTorch code (for a silent self-check)."""
    i, j = x.shape[-2], x.shape[-1]
    q_pos = jnp.arange(i, dtype=jnp.int32)
    k_pos = jnp.arange(j, dtype=jnp.int32)
    rel_pos = k_pos[None, :] - q_pos[:, None]
    n = -rel_pos
    nb = num_buckets
    ret = jnp.zeros_like(n)
    if not causal:
        nb = nb // 2
        ret = ret + (n < 0).astype(jnp.int32) * nb
        n = jnp.abs(n)
    else:
        n = jnp.maximum(n, 0)
    max_exact = nb // 2
    is_small = n < max_exact
    n_f = jnp.maximum(n.astype(jnp.float32), 1.0)
    val_if_large = max_exact + (
        jnp.log(n_f / max_exact) / math.log(max_distance / max_exact) * (nb - max_exact)
    ).astype(jnp.int32)
    val_if_large = jnp.minimum(val_if_large, nb - 1)
    bucket = ret + jnp.where(is_small, n, val_if_large)
    bias = weight[bucket]  # (i, j, H)
    bias = jnp.transpose(bias, (2, 0, 1))[None, :, None, :, :]
    return bias * scale


if __name__ == "__main__":
    num_heads = 4
    num_buckets = 32
    max_distance = 128
    scale = 32 ** -0.5  # typical dim_head ** -0.5

    key_w, key_x = jax.random.split(jax.random.PRNGKey(0))
    # nn.Embedding(num_buckets, num_heads).weight ~ N(0, 1)
    weight = jax.random.normal(key_w, (num_buckets, num_heads), dtype=jnp.float32)
    # x only contributes its last two dims (i, j) to the forward pass
    x = jax.random.normal(key_x, (2, num_heads, 16, 16), dtype=jnp.float32)

    # Non-causal branch; tile_i=8 -> 2 grid steps over i=16 (exercises tiling).
    bias = t5_relative_position_bias(
        x, weight, scale, causal=False,
        num_buckets=num_buckets, max_distance=max_distance, tile_i=8,
    )
    jax.block_until_ready(bias)
    ref = _reference(x, weight, scale, False, num_buckets, max_distance)
    assert bias.shape == (1, num_heads, 1, 16, 16), bias.shape
    assert np.allclose(np.asarray(bias), np.asarray(ref), atol=1e-6), "mismatch (non-causal)"

    # Causal branch.
    bias_c = t5_relative_position_bias(
        x, weight, scale, causal=True,
        num_buckets=num_buckets, max_distance=max_distance, tile_i=8,
    )
    jax.block_until_ready(bias_c)
    ref_c = _reference(x, weight, scale, True, num_buckets, max_distance)
    assert np.allclose(np.asarray(bias_c), np.asarray(ref_c), atol=1e-6), "mismatch (causal)"

    print("KERNEL_OK")
</pallas_src>

<mosaic_0001>
module attributes {stable_mosaic.version = 11 : i64} {
  func.func @kernel(%arg0: i32, %arg1: memref<32x4xf32, #tpu.memory_space<smem>>, %arg2: memref<4x8x16xf32, #tpu.memory_space<vmem>>) attributes {dimension_semantics = [#tpu.dimension_semantics<parallel>], iteration_bounds = array<i64: 2>, scalar_prefetch = 0 : i64, scratch_operands = 0 : i64, tpu.core_type = #tpu.core_type<tc>, window_params = [{transform_indices = @transform_0, window_bounds = array<i64: 32, 4>}, {transform_indices = @transform_1, window_bounds = array<i64: 4, 8, 16>}]} {
    %c8_i32 = arith.constant 8 : i32
    %0 = arith.muli %arg0, %c8_i32 : i32
    %1 = tpu.iota {dimensions = array<i32: 0>} : vector<8x16xi32>
    %2 = vector.broadcast %0 : i32 to vector<8x16xi32>
    %3 = arith.addi %2, %1 : vector<8x16xi32>
    %4 = tpu.iota {dimensions = array<i32: 1>} : vector<8x16xi32>
    %5 = arith.subi %3, %4 : vector<8x16xi32>
    %c0_i32 = arith.constant 0 : i32
    %6 = vector.broadcast %c0_i32 : i32 to vector<8x16xi32>
    %c0_i32_0 = arith.constant 0 : i32
    %7 = vector.broadcast %c0_i32_0 : i32 to vector<8x16xi32>
    %8 = arith.cmpi slt, %5, %7 : vector<8x16xi32>
    %9 = arith.extui %8 : vector<8x16xi1> to vector<8x16xi32>
    %c16_i32 = arith.constant 16 : i32
    %10 = vector.broadcast %c16_i32 : i32 to vector<8x16xi32>
    %11 = arith.muli %9, %10 : vector<8x16xi32>
    %12 = arith.addi %6, %11 : vector<8x16xi32>
    %13 = math.absi %5 : vector<8x16xi32>
    %c8_i32_1 = arith.constant 8 : i32
    %14 = vector.broadcast %c8_i32_1 : i32 to vector<8x16xi32>
    %15 = arith.cmpi slt, %13, %14 : vector<8x16xi32>
    %16 = arith.sitofp %13 : vector<8x16xi32> to vector<8x16xf32>
    %cst = arith.constant 1.000000e+00 : f32
    %17 = vector.broadcast %cst : f32 to vector<8x16xf32>
    %18 = arith.maximumf %16, %17 : vector<8x16xf32>
    %cst_2 = arith.constant 8.000000e+00 : f32
    %19 = vector.broadcast %cst_2 : f32 to vector<8x16xf32>
    %20 = arith.divf %18, %19 : vector<8x16xf32>
    %21 = math.log %20 : vector<8x16xf32>
    %cst_3 = arith.constant 2.77258873 : f32
    %22 = vector.broadcast %cst_3 : f32 to vector<8x16xf32>
    %23 = arith.divf %21, %22 : vector<8x16xf32>
    %cst_4 = arith.constant 8.000000e+00 : f32
    %24 = vector.broadcast %cst_4 : f32 to vector<8x16xf32>
    %25 = arith.mulf %23, %24 : vector<8x16xf32>
    %26 = arith.fptosi %25 : vector<8x16xf32> to vector<8x16xi32>
    %c8_i32_5 = arith.constant 8 : i32
    %27 = vector.broadcast %c8_i32_5 : i32 to vector<8x16xi32>
    %28 = arith.addi %27, %26 : vector<8x16xi32>
    %c15_i32 = arith.constant 15 : i32
    %29 = vector.broadcast %c15_i32 : i32 to vector<8x16xi32>
    %30 = arith.minsi %28, %29 : vector<8x16xi32>
    %31 = arith.select %15, %13, %30 : vector<8x16xi1>, vector<8x16xi32>
    %32 = arith.addi %12, %31 : vector<8x16xi32>
    %cst_6 = arith.constant 0.000000e+00 : f32
    %33 = vector.broadcast %cst_6 : f32 to vector<8x16xf32>
    %cst_7 = arith.constant 0.000000e+00 : f32
    %34 = vector.broadcast %cst_7 : f32 to vector<8x16xf32>
    %cst_8 = arith.constant 0.000000e+00 : f32
    %35 = vector.broadcast %cst_8 : f32 to vector<8x16xf32>
    %cst_9 = arith.constant 0.000000e+00 : f32
    %36 = vector.broadcast %cst_9 : f32 to vector<8x16xf32>
    %c0_i32_10 = arith.constant 0 : i32
    %37 = vector.broadcast %c0_i32_10 : i32 to vector<8x16xi32>
    %38 = arith.cmpi eq, %32, %37 : vector<8x16xi32>
    %c0 = arith.constant 0 : index
    %c0_11 = arith.constant 0 : index
    %39 = memref.load %arg1[%c0, %c0_11] : memref<32x4xf32, #tpu.memory_space<smem>>
    %cst_12 = arith.constant 0.176776692 : f32
    %40 = arith.mulf %39, %cst_12 : f32
    %41 = vector.broadcast %40 : f32 to vector<8x16xf32>
    %42 = arith.select %38, %41, %33 : vector<8x16xi1>, vector<8x16xf32>
    %c0_13 = arith.constant 0 : index
    %c1 = arith.constant 1 : index
    %43 = memref.load %arg1[%c0_13, %c1] : memref<32x4xf32, #tpu.memory_space<smem>>
    %cst_14 = arith.constant 0.176776692 : f32
    %44 = arith.mulf %43, %cst_14 : f32
    %45 = vector.broadcast %44 : f32 to vector<8x16xf32>
    %46 = arith.select %38, %45, %34 : vector<8x16xi1>, vector<8x16xf32>
    %c0_15 = arith.constant 0 : index
    %c2 = arith.constant 2 : index
    %47 = memref.load %arg1[%c0_15, %c2] : memref<32x4xf32, #tpu.memory_space<smem>>
    %cst_16 = arith.constant 0.176776692 : f32
    %48 = arith.mulf %47, %cst_16 : f32
    %49 = vector.broadcast %48 : f32 to vector<8x16xf32>
    %50 = arith.select %38, %49, %35 : vector<8x16xi1>, vector<8x16xf32>
    %c0_17 = arith.constant 0 : index
    %c3 = arith.constant 3 : index
    %51 = memref.load %arg1[%c0_17, %c3] : memref<32x4xf32, #tpu.memory_space<smem>>
    %cst_18 = arith.constant 0.176776692 : f32
    %52 = arith.mulf %51, %cst_18 : f32
    %53 = vector.broadcast %52 : f32 to vector<8x16xf32>
    %54 = arith.select %38, %53, %36 : vector<8x16xi1>, vector<8x16xf32>
    %c1_i32 = arith.constant 1 : i32
    %55 = vector.broadcast %c1_i32 : i32 to vector<8x16xi32>
    %56 = arith.cmpi eq, %32, %55 : vector<8x16xi32>
    %c1_19 = arith.constant 1 : index
    %c0_20 = arith.constant 0 : index
    %57 = memref.load %arg1[%c1_19, %c0_20] : memref<32x4xf32, #tpu.memory_space<smem>>
    %cst_21 = arith.constant 0.176776692 : f32
    %58 = arith.mulf %57, %cst_21 : f32
    %59 = vector.broadcast %58 : f32 to vector<8x16xf32>
    %60 = arith.select %56, %59, %42 : vector<8x16xi1>, vector<8x16xf32>
    %c1_22 = arith.constant 1 : index
    %c1_23 = arith.constant 1 : index
    %61 = memref.load %arg1[%c1_22, %c1_23] : memref<32x4xf32, #tpu.memory_space<smem>>
    %cst_24 = arith.constant 0.176776692 : f32
    %62 = arith.mulf %61, %cst_24 : f32
    %63 = vector.broadcast %62 : f32 to vector<8x16xf32>
    %64 = arith.select %56, %63, %46 : vector<8x16xi1>, vector<8x16xf32>
    %c1_25 = arith.constant 1 : index
    %c2_26 = arith.constant 2 : index
    %65 = memref.load %arg1[%c1_25, %c2_26] : memref<32x4xf32, #tpu.memory_space<smem>>
    %cst_27 = arith.constant 0.176776692 : f32
    %66 = arith.mulf %65, %cst_27 : f32
    %67 = vector.broadcast %66 : f32 to vector<8x16xf32>
    %68 = arith.select %56, %67, %50 : vector<8x16xi1>, vector<8x16xf32>
    %c1_28 = arith.constant 1 : index
    %c3_29 = arith.constant 3 : index
    %69 = memref.load %arg1[%c1_28, %c3_29] : memref<32x4xf32, #tpu.memory_space<smem>>
    %cst_30 = arith.constant 0.176776692 : f32
    %70 = arith.mulf %69, %cst_30 : f32
    %71 = vector.broadcast %70 : f32 to vector<8x16xf32>
    %72 = arith.select %56, %71, %54 : vector<8x16xi1>, vector<8x16xf32>
    %c2_i32 = arith.constant 2 : i32
    %73 = vector.broadcast %c2_i32 : i32 to vector<8x16xi32>
    %74 = arith.cmpi eq, %32, %73 : vector<8x16xi32>
    %c2_31 = arith.constant 2 : index
    %c0_32 = arith.constant 0 : index
    %75 = memref.load %arg1[%c2_31, %c0_32] : memref<32x4xf32, #tpu.memory_space<smem>>
    %cst_33 = arith.constant 0.176776692 : f32
    %76 = arith.mulf %75, %cst_33 : f32
    %77 = vector.broadcast %76 : f32 to vector<8x16xf32>
    %78 = arith.select %74, %77, %60 : vector<8x16xi1>, vector<8x16xf32>
    %c2_34 = arith.constant 2 : index
    %c1_35 = arith.constant 1 : index
    %79 = memref.load %arg1[%c2_34, %c1_35] : memref<32x4xf32, #tpu.memory_space<smem>>
    %cst_36 = arith.constant 0.176776692 : f32
    %80 = arith.mulf %79, %cst_36 : f32
    %81 = vector.broadcast %80 : f32 to vector<8x16xf32>
    %82 = arith.select %74, %81, %64 : vector<8x16xi1>, vector<8x16xf32>
    %c2_37 = arith.constant 2 : index
    %c2_38 = arith.constant 2 : index
    %83 = memref.load %arg1[%c2_37, %c2_38] : memref<32x4xf32, #tpu.memory_space<smem>>
    %cst_39 = arith.constant 0.176776692 : f32
    %84 = arith.mulf %83, %cst_39 : f32
    %85 = vector.broadcast %84 : f32 to vector<8x16xf32>
    %86 = arith.select %74, %85, %68 : vector<8x16xi1>, vector<8x16xf32>
    %c2_40 = arith.constant 2 : index
    %c3_41 = arith.constant 3 : index
    %87 = memref.load %arg1[%c2_40, %c3_41] : memref<32x4xf32, #tpu.memory_space<smem>>
    %cst_42 = arith.constant 0.176776692 : f32
    %88 = arith.mulf %87, %cst_42 : f32
    %89 = vector.broadcast %88 : f32 to vector<8x16xf32>
    %90 = arith.select %74, %89, %72 : vector<8x16xi1>, vector<8x16xf32>
    %c3_i32 = arith.constant 3 : i32
    %91 = vector.broadcast %c3_i32 : i32 to vector<8x16xi32>
    %92 = arith.cmpi eq, %32, %91 : vector<8x16xi32>
    %c3_43 = arith.constant 3 : index
    %c0_44 = arith.constant 0 : index
    %93 = memref.load %arg1[%c3_43, %c0_44] : memref<32x4xf32, #tpu.memory_space<smem>>
    %cst_45 = arith.constant 0.176776692 : f32
    %94 = arith.mulf %93, %cst_45 : f32
    %95 = vector.broadcast %94 : f32 to vector<8x16xf32>
    %96 = arith.select %92, %95, %78 : vector<8x16xi1>, vector<8x16xf32>
    %c3_46 = arith.constant 3 : index
    %c1_47 = arith.constant 1 : index
    %97 = memref.load %arg1[%c3_46, %c1_47] : memref<32x4xf32, #tpu.memory_space<smem>>
    %cst_48 = arith.constant 0.176776692 : f32
    %98 = arith.mulf %97, %cst_48 : f32
    %99 = vector.broadcast %98 : f32 to vector<8x16xf32>
    %100 = arith.select %92, %99, %82 : vector<8x16xi1>, vector<8x16xf32>
    %c3_49 = arith.constant 3 : index
    %c2_50 = arith.constant 2 : index
    %101 = memref.load %arg1[%c3_49, %c2_50] : memref<32x4xf32, #tpu.memory_space<smem>>
    %cst_51 = arith.constant 0.176776692 : f32
    %102 = arith.mulf %101, %cst_51 : f32
    %103 = vector.broadcast %102 : f32 to vector<8x16xf32>
    %104 = arith.select %92, %103, %86 : vector<8x16xi1>, vector<8x16xf32>
    %c3_52 = arith.constant 3 : index
    %c3_53 = arith.constant 3 : index
    %105 = memref.load %arg1[%c3_52, %c3_53] : memref<32x4xf32, #tpu.memory_space<smem>>
    %cst_54 = arith.constant 0.176776692 : f32
    %106 = arith.mulf %105, %cst_54 : f32
    %107 = vector.broadcast %106 : f32 to vector<8x16xf32>
    %108 = arith.select %92, %107, %90 : vector<8x16xi1>, vector<8x16xf32>
    %c4_i32 = arith.constant 4 : i32
    %109 = vector.broadcast %c4_i32 : i32 to vector<8x16xi32>
    %110 = arith.cmpi eq, %32, %109 : vector<8x16xi32>
    %c4 = arith.constant 4 : index
    %c0_55 = arith.constant 0 : index
    %111 = memref.load %arg1[%c4, %c0_55] : memref<32x4xf32, #tpu.memory_space<smem>>
    %cst_56 = arith.constant 0.176776692 : f32
    %112 = arith.mulf %111, %cst_56 : f32
    %113 = vector.broadcast %112 : f32 to vector<8x16xf32>
    %114 = arith.select %110, %113, %96 : vector<8x16xi1>, vector<8x16xf32>
    %c4_57 = arith.constant 4 : index
    %c1_58 = arith.constant 1 : index
    %115 = memref.load %arg1[%c4_57, %c1_58] : memref<32x4xf32, #tpu.memory_space<smem>>
    %cst_59 = arith.constant 0.176776692 : f32
    %116 = arith.mulf %115, %cst_59 : f32
    %117 = vector.broadcast %116 : f32 to vector<8x16xf32>
    %118 = arith.select %110, %117, %100 : vector<8x16xi1>, vector<8x16xf32>
    %c4_60 = arith.constant 4 : index
    %c2_61 = arith.constant 2 : index
    %119 = memref.load %arg1[%c4_60, %c2_61] : memref<32x4xf32, #tpu.memory_space<smem>>
    %cst_62 = arith.constant 0.176776692 : f32
    %120 = arith.mulf %119, %cst_62 : f32
    %121 = vector.broadcast %120 : f32 to vector<8x16xf32>
    %122 = arith.select %110, %121, %104 : vector<8x16xi1>, vector<8x16xf32>
    %c4_63 = arith.constant 4 : index
    %c3_64 = arith.constant 3 : index
    %123 = memref.load %arg1[%c4_63, %c3_64] : memref<32x4xf32, #tpu.memory_space<smem>>
    %cst_65 = arith.constant 0.176776692 : f32
    %124 = arith.mulf %123, %cst_65 : f32
    %125 = vector.broadcast %124 : f32 to vector<8x16xf32>
    %126 = arith.select %110, %125, %108 : vector<8x16xi1>, vector<8x16xf32>
    %c5_i32 = arith.constant 5 : i32
    %127 = vector.broadcast %c5_i32 : i32 to vector<8x16xi32>
    %128 = arith.cmpi eq, %32, %127 : vector<8x16xi32>
    %c5 = arith.constant 5 : index
    %c0_66 = arith.constant 0 : index
    %129 = memref.load %arg1[%c5, %c0_66] : memref<32x4xf32, #tpu.memory_space<smem>>
    %cst_67 = arith.constant 0.176776692 : f32
    %130 = arith.mulf %129, %cst_67 : f32
    %131 = vector.broadcast %130 : f32 to vector<8x16xf32>
    %132 = arith.select %128, %131, %114 : vector<8x16xi1>, vector<8x16xf32>
    %c5_68 = arith.constant 5 : index
    %c1_69 = arith.constant 1 : index
    %133 = memref.load %arg1[%c5_68, %c1_69] : memref<32x4xf32, #tpu.memory_space<smem>>
    %cst_70 = arith.constant 0.176776692 : f32
    %134 = arith.mulf %133, %cst_70 : f32
    %135 = vector.broadcast %134 : f32 to vector<8x16xf32>
    %136 = arith.select %128, %135, %118 : vector<8x16xi1>, vector<8x16xf32>
    %c5_71 = arith.constant 5 : index
    %c2_72 = arith.constant 2 : index
    %137 = memref.load %arg1[%c5_71, %c2_72] : memref<32x4xf32, #tpu.memory_space<smem>>
    %cst_73 = arith.constant 0.176776692 : f32
    %138 = arith.mulf %137, %cst_73 : f32
    %139 = vector.broadcast %138 : f32 to vector<8x16xf32>
    %140 = arith.select %128, %139, %122 : vector<8x16xi1>, vector<8x16xf32>
    %c5_74 = arith.constant 5 : index
    %c3_75 = arith.constant 3 : index
    %141 = memref.load %arg1[%c5_74, %c3_75] : memref<32x4xf32, #tpu.memory_space<smem>>
    %cst_76 = arith.constant 0.176776692 : f32
    %142 = arith.mulf %141, %cst_76 : f32
    %143 = vector.broadcast %142 : f32 to vector<8x16xf32>
    %144 = arith.select %128, %143, %126 : vector<8x16xi1>, vector<8x16xf32>
    %c6_i32 = arith.constant 6 : i32
    %145 = vector.broadcast %c6_i32 : i32 to vector<8x16xi32>
    %146 = arith.cmpi eq, %32, %145 : vector<8x16xi32>
    %c6 = arith.constant 6 : index
    %c0_77 = arith.constant 0 : index
    %147 = memref.load %arg1[%c6, %c0_77] : memref<32x4xf32, #tpu.memory_space<smem>>
    %cst_78 = arith.constant 0.176776692 : f32
    %148 = arith.mulf %147, %cst_78 : f32
    %149 = vector.broadcast %148 : f32 to vector<8x16xf32>
    %150 = arith.select %146, %149, %132 : vector<8x16xi1>, vector<8x16xf32>
    %c6_79 = arith.constant 6 : index
    %c1_80 = arith.constant 1 : index
    %151 = memref.load %arg1[%c6_79, %c1_80] : memref<32x4xf32, #tpu.memory_space<smem>>
    %cst_81 = arith.constant 0.176776692 : f32
    %152 = arith.mulf %151, %cst_81 : f32
    %153 = vector.broadcast %152 : f32 to vector<8x16xf32>
    %154 = arith.select %146, %153, %136 : vector<8x16xi1>, vector<8x16xf32>
    %c6_82 = arith.constant 6 : index
    %c2_83 = arith.constant 2 : index
    %155 = memref.load %arg1[%c6_82, %c2_83] : memref<32x4xf32, #tpu.memory_space<smem>>
    %cst_84 = arith.constant 0.176776692 : f32
    %156 = arith.mulf %155, %cst_84 : f32
    %157 = vector.broadcast %156 : f32 to vector<8x16xf32>
    %158 = arith.select %146, %157, %140 : vector<8x16xi1>, vector<8x16xf32>
    %c6_85 = arith.constant 6 : index
    %c3_86 = arith.constant 3 : index
    %159 = memref.load %arg1[%c6_85, %c3_86] : memref<32x4xf32, #tpu.memory_space<smem>>
    %cst_87 = arith.constant 0.176776692 : f32
    %160 = arith.mulf %159, %cst_87 : f32
    %161 = vector.broadcast %160 : f32 to vector<8x16xf32>
    %162 = arith.select %146, %161, %144 : vector<8x16xi1>, vector<8x16xf32>
    %c7_i32 = arith.constant 7 : i32
    %163 = vector.broadcast %c7_i32 : i32 to vector<8x16xi32>
    %164 = arith.cmpi eq, %32, %163 : vector<8x16xi32>
    %c7 = arith.constant 7 : index
    %c0_88 = arith.constant 0 : index
    %165 = memref.load %arg1[%c7, %c0_88] : memref<32x4xf32, #tpu.memory_space<smem>>
    %cst_89 = arith.constant 0.176776692 : f32
    %166 = arith.mulf %165, %cst_89 : f32
    %167 = vector.broadcast %166 : f32 to vector<8x16xf32>
    %168 = arith.select %164, %167, %150 : vector<8x16xi1>, vector<8x16xf32>
    %c7_90 = arith.constant 7 : index
    %c1_91 = arith.constant 1 : index
    %169 = memref.load %arg1[%c7_90, %c1_91] : memref<32x4xf32, #tpu.memory_space<smem>>
    %cst_92 = arith.constant 0.176776692 : f32
    %170 = arith.mulf %169, %cst_92 : f32
    %171 = vector.broadcast %170 : f32 to vector<8x16xf32>
    %172 = arith.select %164, %171, %154 : vector<8x16xi1>, vector<8x16xf32>
    %c7_93 = arith.constant 7 : index
    %c2_94 = arith.constant 2 : index
    %173 = memref.load %arg1[%c7_93, %c2_94] : memref<32x4xf32, #tpu.memory_space<smem>>
    %cst_95 = arith.constant 0.176776692 : f32
    %174 = arith.mulf %173, %cst_95 : f32
    %175 = vector.broadcast %174 : f32 to vector<8x16xf32>
    %176 = arith.select %164, %175, %158 : vector<8x16xi1>, vector<8x16xf32>
    %c7_96 = arith.constant 7 : index
    %c3_97 = arith.constant 3 : index
    %177 = memref.load %arg1[%c7_96, %c3_97] : memref<32x4xf32, #tpu.memory_space<smem>>
    %cst_98 = arith.constant 0.176776692 : f32
    %178 = arith.mulf %177, %cst_98 : f32
    %179 = vector.broadcast %178 : f32 to vector<8x16xf32>
    %180 = arith.select %164, %179, %162 : vector<8x16xi1>, vector<8x16xf32>
    %c8_i32_99 = arith.constant 8 : i32
    %181 = vector.broadcast %c8_i32_99 : i32 to vector<8x16xi32>
    %182 = arith.cmpi eq, %32, %181 : vector<8x16xi32>
    %c8 = arith.constant 8 : index
    %c0_100 = arith.constant 0 : index
    %183 = memref.load %arg1[%c8, %c0_100] : memref<32x4xf32, #tpu.memory_space<smem>>
    %cst_101 = arith.constant 0.176776692 : f32
    %184 = arith.mulf %183, %cst_101 : f32
    %185 = vector.broadcast %184 : f32 to vector<8x16xf32>
    %186 = arith.select %182, %185, %168 : vector<8x16xi1>, vector<8x16xf32>
    %c8_102 = arith.constant 8 : index
    %c1_103 = arith.constant 1 : index
    %187 = memref.load %arg1[%c8_102, %c1_103] : memref<32x4xf32, #tpu.memory_space<smem>>
    %cst_104 = arith.constant 0.176776692 : f32
    %188 = arith.mulf %187, %cst_104 : f32
    %189 = vector.broadcast %188 : f32 to vector<8x16xf32>
    %190 = arith.select %182, %189, %172 : vector<8x16xi1>, vector<8x16xf32>
    %c8_105 = arith.constant 8 : index
    %c2_106 = arith.constant 2 : index
    %191 = memref.load %arg1[%c8_105, %c2_106] : memref<32x4xf32, #tpu.memory_space<smem>>
    %cst_107 = arith.constant 0.176776692 : f32
    %192 = arith.mulf %191, %cst_107 : f32
    %193 = vector.broadcast %192 : f32 to vector<8x16xf32>
    %194 = arith.select %182, %193, %176 : vector<8x16xi1>, vector<8x16xf32>
    %c8_108 = arith.constant 8 : index
    %c3_109 = arith.constant 3 : index
    %195 = memref.load %arg1[%c8_108, %c3_109] : memref<32x4xf32, #tpu.memory_space<smem>>
    %cst_110 = arith.constant 0.176776692 : f32
    %196 = arith.mulf %195, %cst_110 : f32
    %197 = vector.broadcast %196 : f32 to vector<8x16xf32>
    %198 = arith.select %182, %197, %180 : vector<8x16xi1>, vector<8x16xf32>
    %c9_i32 = arith.constant 9 : i32
    %199 = vector.broadcast %c9_i32 : i32 to vector<8x16xi32>
    %200 = arith.cmpi eq, %32, %199 : vector<8x16xi32>
    %c9 = arith.constant 9 : index
    %c0_111 = arith.constant 0 : index
    %201 = memref.load %arg1[%c9, %c0_111] : memref<32x4xf32, #tpu.memory_space<smem>>
    %cst_112 = arith.constant 0.176776692 : f32
    %202 = arith.mulf %201, %cst_112 : f32
    %203 = vector.broadcast %202 : f32 to vector<8x16xf32>
    %204 = arith.select %200, %203, %186 : vector<8x16xi1>, vector<8x16xf32>
    %c9_113 = arith.constant 9 : index
    %c1_114 = arith.constant 1 : index
    %205 = memref.load %arg1[%c9_113, %c1_114] : memref<32x4xf32, #tpu.memory_space<smem>>
    %cst_115 = arith.constant 0.176776692 : f32
    %206 = arith.mulf %205, %cst_115 : f32
    %207 = vector.broadcast %206 : f32 to vector<8x16xf32>
    %208 = arith.select %200, %207, %190 : vector<8x16xi1>, vector<8x16xf32>
    %c9_116 = arith.constant 9 : index
    %c2_117 = arith.constant 2 : index
    %209 = memref.load %arg1[%c9_116, %c2_117] : memref<32x4xf32, #tpu.memory_space<smem>>
    %cst_118 = arith.constant 0.176776692 : f32
    %210 = arith.mulf %209, %cst_118 : f32
    %211 = vector.broadcast %210 : f32 to vector<8x16xf32>
    %212 = arith.select %200, %211, %194 : vector<8x16xi1>, vector<8x16xf32>
    %c9_119 = arith.constant 9 : index
    %c3_120 = arith.constant 3 : index
    %213 = memref.load %arg1[%c9_119, %c3_120] : memref<32x4xf32, #tpu.memory_space<smem>>
    %cst_121 = arith.constant 0.176776692 : f32
    %214 = arith.mulf %213, %cst_121 : f32
    %215 = vector.broadcast %214 : f32 to vector<8x16xf32>
    %216 = arith.select %200, %215, %198 : vector<8x16xi1>, vector<8x16xf32>
    %c10_i32 = arith.constant 10 : i32
    %217 = vector.broadcast %c10_i32 : i32 to vector<8x16xi32>
    %218 = arith.cmpi eq, %32, %217 : vector<8x16xi32>
    %c10 = arith.constant 10 : index
    %c0_122 = arith.constant 0 : index
    %219 = memref.load %arg1[%c10, %c0_122] : memref<32x4xf32, #tpu.memory_space<smem>>
    %cst_123 = arith.constant 0.176776692 : f32
    %220 = arith.mulf %219, %cst_123 : f32
    %221 = vector.broadcast %220 : f32 to vector<8x16xf32>
    %222 = arith.select %218, %221, %204 : vector<8x16xi1>, vector<8x16xf32>
    %c10_124 = arith.constant 10 : index
    %c1_125 = arith.constant 1 : index
    %223 = memref.load %arg1[%c10_124, %c1_125] : memref<32x4xf32, #tpu.memory_space<smem>>
    %cst_126 = arith.constant 0.176776692 : f32
    %224 = arith.mulf %223, %cst_126 : f32
    %225 = vector.broadcast %224 : f32 to vector<8x16xf32>
    %226 = arith.select %218, %225, %208 : vector<8x16xi1>, vector<8x16xf32>
    %c10_127 = arith.constant 10 : index
    %c2_128 = arith.constant 2 : index
    %227 = memref.load %arg1[%c10_127, %c2_128] : memref<32x4xf32, #tpu.memory_space<smem>>
    %cst_129 = arith.constant 0.176776692 : f32
    %228 = arith.mulf %227, %cst_129 : f32
    %229 = vector.broadcast %228 : f32 to vector<8x16xf32>
    %230 = arith.select %218, %229, %212 : vector<8x16xi1>, vector<8x16xf32>
    %c10_130 = arith.constant 10 : index
    %c3_131 = arith.constant 3 : index
    %231 = memref.load %arg1[%c10_130, %c3_131] : memref<32x4xf32, #tpu.memory_space<smem>>
    %cst_132 = arith.constant 0.176776692 : f32
    %232 = arith.mulf %231, %cst_132 : f32
    %233 = vector.broadcast %232 : f32 to vector<8x16xf32>
    %234 = arith.select %218, %233, %216 : vector<8x16xi1>, vector<8x16xf32>
    %c11_i32 = arith.constant 11 : i32
    %235 = vector.broadcast %c11_i32 : i32 to vector<8x16xi32>
    %236 = arith.cmpi eq, %32, %235 : vector<8x16xi32>
    %c11 = arith.constant 11 : index
    %c0_133 = arith.constant 0 : index
    %237 = memref.load %arg1[%c11, %c0_133] : memref<32x4xf32, #tpu.memory_space<smem>>
    %cst_134 = arith.constant 0.176776692 : f32
    %238 = arith.mulf %237, %cst_134 : f32
    %239 = vector.broadcast %238 : f32 to vector<8x16xf32>
    %240 = arith.select %236, %239, %222 : vector<8x16xi1>, vector<8x16xf32>
    %c11_135 = arith.constant 11 : index
    %c1_136 = arith.constant 1 : index
    %241 = memref.load %arg1[%c11_135, %c1_136] : memref<32x4xf32, #tpu.memory_space<smem>>
    %cst_137 = arith.constant 0.176776692 : f32
    %242 = arith.mulf %241, %cst_137 : f32
    %243 = vector.broadcast %242 : f32 to vector<8x16xf32>
    %244 = arith.select %236, %243, %226 : vector<8x16xi1>, vector<8x16xf32>
    %c11_138 = arith.constant 11 : index
    %c2_139 = arith.constant 2 : index
    %245 = memref.load %arg1[%c11_138, %c2_139] : memref<32x4xf32, #tpu.memory_space<smem>>
    %cst_140 = arith.constant 0.176776692 : f32
    %246 = arith.mulf %245, %cst_140 : f32
    %247 = vector.broadcast %246 : f32 to vector<8x16xf32>
    %248 = arith.select %236, %247, %230 : vector<8x16xi1>, vector<8x16xf32>
    %c11_141 = arith.constant 11 : index
    %c3_142 = arith.constant 3 : index
    %249 = memref.load %arg1[%c11_141, %c3_142] : memref<32x4xf32, #tpu.memory_space<smem>>
    %cst_143 = arith.constant 0.176776692 : f32
    %250 = arith.mulf %249, %cst_143 : f32
    %251 = vector.broadcast %250 : f32 to vector<8x16xf32>
    %252 = arith.select %236, %251, %234 : vector<8x16xi1>, vector<8x16xf32>
    %c12_i32 = arith.constant 12 : i32
    %253 = vector.broadcast %c12_i32 : i32 to vector<8x16xi32>
    %254 = arith.cmpi eq, %32, %253 : vector<8x16xi32>
    %c12 = arith.constant 12 : index
    %c0_144 = arith.constant 0 : index
    %255 = memref.load %arg1[%c12, %c0_144] : memref<32x4xf32, #tpu.memory_space<smem>>
    %cst_145 = arith.constant 0.176776692 : f32
    %256 = arith.mulf %255, %cst_145 : f32
    %257 = vector.broadcast %256 : f32 to vector<8x16xf32>
    %258 = arith.select %254, %257, %240 : vector<8x16xi1>, vector<8x16xf32>
    %c12_146 = arith.constant 12 : index
    %c1_147 = arith.constant 1 : index
    %259 = memref.load %arg1[%c12_146, %c1_147] : memref<32x4xf32, #tpu.memory_space<smem>>
    %cst_148 = arith.constant 0.176776692 : f32
    %260 = arith.mulf %259, %cst_148 : f32
    %261 = vector.broadcast %260 : f32 to vector<8x16xf32>
    %262 = arith.select %254, %261, %244 : vector<8x16xi1>, vector<8x16xf32>
    %c12_149 = arith.constant 12 : index
    %c2_150 = arith.constant 2 : index
    %263 = memref.load %arg1[%c12_149, %c2_150] : memref<32x4xf32, #tpu.memory_space<smem>>
    %cst_151 = arith.constant 0.176776692 : f32
    %264 = arith.mulf %263, %cst_151 : f32
    %265 = vector.broadcast %264 : f32 to vector<8x16xf32>
    %266 = arith.select %254, %265, %248 : vector<8x16xi1>, vector<8x16xf32>
    %c12_152 = arith.constant 12 : index
    %c3_153 = arith.constant 3 : index
    %267 = memref.load %arg1[%c12_152, %c3_153] : memref<32x4xf32, #tpu.memory_space<smem>>
    %cst_154 = arith.constant 0.176776692 : f32
    %268 = arith.mulf %267, %cst_154 : f32
    %269 = vector.broadcast %268 : f32 to vector<8x16xf32>
    %270 = arith.select %254, %269, %252 : vector<8x16xi1>, vector<8x16xf32>
    %c13_i32 = arith.constant 13 : i32
    %271 = vector.broadcast %c13_i32 : i32 to vector<8x16xi32>
    %272 = arith.cmpi eq, %32, %271 : vector<8x16xi32>
    %c13 = arith.constant 13 : index
    %c0_155 = arith.constant 0 : index
    %273 = memref.load %arg1[%c13, %c0_155] : memref<32x4xf32, #tpu.memory_space<smem>>
    %cst_156 = arith.constant 0.176776692 : f32
    %274 = arith.mulf %273, %cst_156 : f32
    %275 = vector.broadcast %274 : f32 to vector<8x16xf32>
    %276 = arith.select %272, %275, %258 : vector<8x16xi1>, vector<8x16xf32>
    %c13_157 = arith.constant 13 : index
    %c1_158 = arith.constant 1 : index
    %277 = memref.load %arg1[%c13_157, %c1_158] : memref<32x4xf32, #tpu.memory_space<smem>>
    %cst_159 = arith.constant 0.176776692 : f32
    %278 = arith.mulf %277, %cst_159 : f32
    %279 = vector.broadcast %278 : f32 to vector<8x16xf32>
    %280 = arith.select %272, %279, %262 : vector<8x16xi1>, vector<8x16xf32>
    %c13_160 = arith.constant 13 : index
    %c2_161 = arith.constant 2 : index
    %281 = memref.load %arg1[%c13_160, %c2_161] : memref<32x4xf32, #tpu.memory_space<smem>>
    %cst_162 = arith.constant 0.176776692 : f32
    %282 = arith.mulf %281, %cst_162 : f32
    %283 = vector.broadcast %282 : f32 to vector<8x16xf32>
    %284 = arith.select %272, %283, %266 : vector<8x16xi1>, vector<8x16xf32>
    %c13_163 = arith.constant 13 : index
    %c3_164 = arith.constant 3 : index
    %285 = memref.load %arg1[%c13_163, %c3_164] : memref<32x4xf32, #tpu.memory_space<smem>>
    %cst_165 = arith.constant 0.176776692 : f32
    %286 = arith.mulf %285, %cst_165 : f32
    %287 = vector.broadcast %286 : f32 to vector<8x16xf32>
    %288 = arith.select %272, %287, %270 : vector<8x16xi1>, vector<8x16xf32>
    %c14_i32 = arith.constant 14 : i32
    %289 = vector.broadcast %c14_i32 : i32 to vector<8x16xi32>
    %290 = arith.cmpi eq, %32, %289 : vector<8x16xi32>
    %c14 = arith.constant 14 : index
    %c0_166 = arith.constant 0 : index
    %291 = memref.load %arg1[%c14, %c0_166] : memref<32x4xf32, #tpu.memory_space<smem>>
    %cst_167 = arith.constant 0.176776692 : f32
    %292 = arith.mulf %291, %cst_167 : f32
    %293 = vector.broadcast %292 : f32 to vector<8x16xf32>
    %294 = arith.select %290, %293, %276 : vector<8x16xi1>, vector<8x16xf32>
    %c14_168 = arith.constant 14 : index
    %c1_169 = arith.constant 1 : index
    %295 = memref.load %arg1[%c14_168, %c1_169] : memref<32x4xf32, #tpu.memory_space<smem>>
    %cst_170 = arith.constant 0.176776692 : f32
    %296 = arith.mulf %295, %cst_170 : f32
    %297 = vector.broadcast %296 : f32 to vector<8x16xf32>
    %298 = arith.select %290, %297, %280 : vector<8x16xi1>, vector<8x16xf32>
    %c14_171 = arith.constant 14 : index
    %c2_172 = arith.constant 2 : index
    %299 = memref.load %arg1[%c14_171, %c2_172] : memref<32x4xf32, #tpu.memory_space<smem>>
    %cst_173 = arith.constant 0.176776692 : f32
    %300 = arith.mulf %299, %cst_173 : f32
    %301 = vector.broadcast %300 : f32 to vector<8x16xf32>
    %302 = arith.select %290, %301, %284 : vector<8x16xi1>, vector<8x16xf32>
    %c14_174 = arith.constant 14 : index
    %c3_175 = arith.constant 3 : index
    %303 = memref.load %arg1[%c14_174, %c3_175] : memref<32x4xf32, #tpu.memory_space<smem>>
    %cst_176 = arith.constant 0.176776692 : f32
    %304 = arith.mulf %303, %cst_176 : f32
    %305 = vector.broadcast %304 : f32 to vector<8x16xf32>
    %306 = arith.select %290, %305, %288 : vector<8x16xi1>, vector<8x16xf32>
    %c15_i32_177 = arith.constant 15 : i32
    %307 = vector.broadcast %c15_i32_177 : i32 to vector<8x16xi32>
    %308 = arith.cmpi eq, %32, %307 : vector<8x16xi32>
    %c15 = arith.constant 15 : index
    %c0_178 = arith.constant 0 : index
    %309 = memref.load %arg1[%c15, %c0_178] : memref<32x4xf32, #tpu.memory_space<smem>>
    %cst_179 = arith.constant 0.176776692 : f32
    %310 = arith.mulf %309, %cst_179 : f32
    %311 = vector.broadcast %310 : f32 to vector<8x16xf32>
    %312 = arith.select %308, %311, %294 : vector<8x16xi1>, vector<8x16xf32>
    %c15_180 = arith.constant 15 : index
    %c1_181 = arith.constant 1 : index
    %313 = memref.load %arg1[%c15_180, %c1_181] : memref<32x4xf32, #tpu.memory_space<smem>>
    %cst_182 = arith.constant 0.176776692 : f32
    %314 = arith.mulf %313, %cst_182 : f32
    %315 = vector.broadcast %314 : f32 to vector<8x16xf32>
    %316 = arith.select %308, %315, %298 : vector<8x16xi1>, vector<8x16xf32>
    %c15_183 = arith.constant 15 : index
    %c2_184 = arith.constant 2 : index
    %317 = memref.load %arg1[%c15_183, %c2_184] : memref<32x4xf32, #tpu.memory_space<smem>>
    %cst_185 = arith.constant 0.176776692 : f32
    %318 = arith.mulf %317, %cst_185 : f32
    %319 = vector.broadcast %318 : f32 to vector<8x16xf32>
    %320 = arith.select %308, %319, %302 : vector<8x16xi1>, vector<8x16xf32>
    %c15_186 = arith.constant 15 : index
    %c3_187 = arith.constant 3 : index
    %321 = memref.load %arg1[%c15_186, %c3_187] : memref<32x4xf32, #tpu.memory_space<smem>>
    %cst_188 = arith.constant 0.176776692 : f32
    %322 = arith.mulf %321, %cst_188 : f32
    %323 = vector.broadcast %322 : f32 to vector<8x16xf32>
    %324 = arith.select %308, %323, %306 : vector<8x16xi1>, vector<8x16xf32>
    %c16_i32_189 = arith.constant 16 : i32
    %325 = vector.broadcast %c16_i32_189 : i32 to vector<8x16xi32>
    %326 = arith.cmpi eq, %32, %325 : vector<8x16xi32>
    %c16 = arith.constant 16 : index
    %c0_190 = arith.constant 0 : index
    %327 = memref.load %arg1[%c16, %c0_190] : memref<32x4xf32, #tpu.memory_space<smem>>
    %cst_191 = arith.constant 0.176776692 : f32
    %328 = arith.mulf %327, %cst_191 : f32
    %329 = vector.broadcast %328 : f32 to vector<8x16xf32>
    %330 = arith.select %326, %329, %312 : vector<8x16xi1>, vector<8x16xf32>
    %c16_192 = arith.constant 16 : index
    %c1_193 = arith.constant 1 : index
    %331 = memref.load %arg1[%c16_192, %c1_193] : memref<32x4xf32, #tpu.memory_space<smem>>
    %cst_194 = arith.constant 0.176776692 : f32
    %332 = arith.mulf %331, %cst_194 : f32
    %333 = vector.broadcast %332 : f32 to vector<8x16xf32>
    %334 = arith.select %326, %333, %316 : vector<8x16xi1>, vector<8x16xf32>
    %c16_195 = arith.constant 16 : index
    %c2_196 = arith.constant 2 : index
    %335 = memref.load %arg1[%c16_195, %c2_196] : memref<32x4xf32, #tpu.memory_space<smem>>
    %cst_197 = arith.constant 0.176776692 : f32
    %336 = arith.mulf %335, %cst_197 : f32
    %337 = vector.broadcast %336 : f32 to vector<8x16xf32>
    %338 = arith.select %326, %337, %320 : vector<8x16xi1>, vector<8x16xf32>
    %c16_198 = arith.constant 16 : index
    %c3_199 = arith.constant 3 : index
    %339 = memref.load %arg1[%c16_198, %c3_199] : memref<32x4xf32, #tpu.memory_space<smem>>
    %cst_200 = arith.constant 0.176776692 : f32
    %340 = arith.mulf %339, %cst_200 : f32
    %341 = vector.broadcast %340 : f32 to vector<8x16xf32>
    %342 = arith.select %326, %341, %324 : vector<8x16xi1>, vector<8x16xf32>
    %c17_i32 = arith.constant 17 : i32
    %343 = vector.broadcast %c17_i32 : i32 to vector<8x16xi32>
    %344 = arith.cmpi eq, %32, %343 : vector<8x16xi32>
    %c17 = arith.constant 17 : index
    %c0_201 = arith.constant 0 : index
    %345 = memref.load %arg1[%c17, %c0_201] : memref<32x4xf32, #tpu.memory_space<smem>>
    %cst_202 = arith.constant 0.176776692 : f32
    %346 = arith.mulf %345, %cst_202 : f32
    %347 = vector.broadcast %346 : f32 to vector<8x16xf32>
    %348 = arith.select %344, %347, %330 : vector<8x16xi1>, vector<8x16xf32>
    %c17_203 = arith.constant 17 : index
    %c1_204 = arith.constant 1 : index
    %349 = memref.load %arg1[%c17_203, %c1_204] : memref<32x4xf32, #tpu.memory_space<smem>>
    %cst_205 = arith.constant 0.176776692 : f32
    %350 = arith.mulf %349, %cst_205 : f32
    %351 = vector.broadcast %350 : f32 to vector<8x16xf32>
    %352 = arith.select %344, %351, %334 : vector<8x16xi1>, vector<8x16xf32>
    %c17_206 = arith.constant 17 : index
    %c2_207 = arith.constant 2 : index
    %353 = memref.load %arg1[%c17_206, %c2_207] : memref<32x4xf32, #tpu.memory_space<smem>>
    %cst_208 = arith.constant 0.176776692 : f32
    %354 = arith.mulf %353, %cst_208 : f32
    %355 = vector.broadcast %354 : f32 to vector<8x16xf32>
    %356 = arith.select %344, %355, %338 : vector<8x16xi1>, vector<8x16xf32>
    %c17_209 = arith.constant 17 : index
    %c3_210 = arith.constant 3 : index
    %357 = memref.load %arg1[%c17_209, %c3_210] : memref<32x4xf32, #tpu.memory_space<smem>>
    %cst_211 = arith.constant 0.176776692 : f32
    %358 = arith.mulf %357, %cst_211 : f32
    %359 = vector.broadcast %358 : f32 to vector<8x16xf32>
    %360 = arith.select %344, %359, %342 : vector<8x16xi1>, vector<8x16xf32>
    %c18_i32 = arith.constant 18 : i32
    %361 = vector.broadcast %c18_i32 : i32 to vector<8x16xi32>
    %362 = arith.cmpi eq, %32, %361 : vector<8x16xi32>
    %c18 = arith.constant 18 : index
    %c0_212 = arith.constant 0 : index
    %363 = memref.load %arg1[%c18, %c0_212] : memref<32x4xf32, #tpu.memory_space<smem>>
    %cst_213 = arith.constant 0.176776692 : f32
    %364 = arith.mulf %363, %cst_213 : f32
    %365 = vector.broadcast %364 : f32 to vector<8x16xf32>
    %366 = arith.select %362, %365, %348 : vector<8x16xi1>, vector<8x16xf32>
    %c18_214 = arith.constant 18 : index
    %c1_215 = arith.constant 1 : index
    %367 = memref.load %arg1[%c18_214, %c1_215] : memref<32x4xf32, #tpu.memory_space<smem>>
    %cst_216 = arith.constant 0.176776692 : f32
    %368 = arith.mulf %367, %cst_216 : f32
    %369 = vector.broadcast %368 : f32 to vector<8x16xf32>
    %370 = arith.select %362, %369, %352 : vector<8x16xi1>, vector<8x16xf32>
    %c18_217 = arith.constant 18 : index
    %c2_218 = arith.constant 2 : index
    %371 = memref.load %arg1[%c18_217, %c2_218] : memref<32x4xf32, #tpu.memory_space<smem>>
    %cst_219 = arith.constant 0.176776692 : f32
    %372 = arith.mulf %371, %cst_219 : f32
    %373 = vector.broadcast %372 : f32 to vector<8x16xf32>
    %374 = arith.select %362, %373, %356 : vector<8x16xi1>, vector<8x16xf32>
    %c18_220 = arith.constant 18 : index
    %c3_221 = arith.constant 3 : index
    %375 = memref.load %arg1[%c18_220, %c3_221] : memref<32x4xf32, #tpu.memory_space<smem>>
    %cst_222 = arith.constant 0.176776692 : f32
    %376 = arith.mulf %375, %cst_222 : f32
    %377 = vector.broadcast %376 : f32 to vector<8x16xf32>
    %378 = arith.select %362, %377, %360 : vector<8x16xi1>, vector<8x16xf32>
    %c19_i32 = arith.constant 19 : i32
    %379 = vector.broadcast %c19_i32 : i32 to vector<8x16xi32>
    %380 = arith.cmpi eq, %32, %379 : vector<8x16xi32>
    %c19 = arith.constant 19 : index
    %c0_223 = arith.constant 0 : index
    %381 = memref.load %arg1[%c19, %c0_223] : memref<32x4xf32, #tpu.memory_space<smem>>
    %cst_224 = arith.constant 0.176776692 : f32
    %382 = arith.mulf %381, %cst_224 : f32
    %383 = vector.broadcast %382 : f32 to vector<8x16xf32>
    %384 = arith.select %380, %383, %366 : vector<8x16xi1>, vector<8x16xf32>
    %c19_225 = arith.constant 19 : index
    %c1_226 = arith.constant 1 : index
    %385 = memref.load %arg1[%c19_225, %c1_226] : memref<32x4xf32, #tpu.memory_space<smem>>
    %cst_227 = arith.constant 0.176776692 : f32
    %386 = arith.mulf %385, %cst_227 : f32
    %387 = vector.broadcast %386 : f32 to vector<8x16xf32>
    %388 = arith.select %380, %387, %370 : vector<8x16xi1>, vector<8x16xf32>
    %c19_228 = arith.constant 19 : index
    %c2_229 = arith.constant 2 : index
    %389 = memref.load %arg1[%c19_228, %c2_229] : memref<32x4xf32, #tpu.memory_space<smem>>
    %cst_230 = arith.constant 0.176776692 : f32
    %390 = arith.mulf %389, %cst_230 : f32
    %391 = vector.broadcast %390 : f32 to vector<8x16xf32>
    %392 = arith.select %380, %391, %374 : vector<8x16xi1>, vector<8x16xf32>
    %c19_231 = arith.constant 19 : index
    %c3_232 = arith.constant 3 : index
    %393 = memref.load %arg1[%c19_231, %c3_232] : memref<32x4xf32, #tpu.memory_space<smem>>
    %cst_233 = arith.constant 0.176776692 : f32
    %394 = arith.mulf %393, %cst_233 : f32
    %395 = vector.broadcast %394 : f32 to vector<8x16xf32>
    %396 = arith.select %380, %395, %378 : vector<8x16xi1>, vector<8x16xf32>
    %c20_i32 = arith.constant 20 : i32
    %397 = vector.broadcast %c20_i32 : i32 to vector<8x16xi32>
    %398 = arith.cmpi eq, %32, %397 : vector<8x16xi32>
    %c20 = arith.constant 20 : index
    %c0_234 = arith.constant 0 : index
    %399 = memref.load %arg1[%c20, %c0_234] : memref<32x4xf32, #tpu.memory_space<smem>>
    %cst_235 = arith.constant 0.176776692 : f32
    %400 = arith.mulf %399, %cst_235 : f32
    %401 = vector.broadcast %400 : f32 to vector<8x16xf32>
    %402 = arith.select %398, %401, %384 : vector<8x16xi1>, vector<8x16xf32>
    %c20_236 = arith.constant 20 : index
    %c1_237 = arith.constant 1 : index
    %403 = memref.load %arg1[%c20_236, %c1_237] : memref<32x4xf32, #tpu.memory_space<smem>>
    %cst_238 = arith.constant 0.176776692 : f32
    %404 = arith.mulf %403, %cst_238 : f32
    %405 = vector.broadcast %404 : f32 to vector<8x16xf32>
    %406 = arith.select %398, %405, %388 : vector<8x16xi1>, vector<8x16xf32>
    %c20_239 = arith.constant 20 : index
    %c2_240 = arith.constant 2 : index
    %407 = memref.load %arg1[%c20_239, %c2_240] : memref<32x4xf32, #tpu.memory_space<smem>>
    %cst_241 = arith.constant 0.176776692 : f32
    %408 = arith.mulf %407, %cst_241 : f32
    %409 = vector.broadcast %408 : f32 to vector<8x16xf32>
    %410 = arith.select %398, %409, %392 : vector<8x16xi1>, vector<8x16xf32>
    %c20_242 = arith.constant 20 : index
    %c3_243 = arith.constant 3 : index
    %411 = memref.load %arg1[%c20_242, %c3_243] : memref<32x4xf32, #tpu.memory_space<smem>>
    %cst_244 = arith.constant 0.176776692 : f32
    %412 = arith.mulf %411, %cst_244 : f32
    %413 = vector.broadcast %412 : f32 to vector<8x16xf32>
    %414 = arith.select %398, %413, %396 : vector<8x16xi1>, vector<8x16xf32>
    %c21_i32 = arith.constant 21 : i32
    %415 = vector.broadcast %c21_i32 : i32 to vector<8x16xi32>
    %416 = arith.cmpi eq, %32, %415 : vector<8x16xi32>
    %c21 = arith.constant 21 : index
    %c0_245 = arith.constant 0 : index
    %417 = memref.load %arg1[%c21, %c0_245] : memref<32x4xf32, #tpu.memory_space<smem>>
    %cst_246 = arith.constant 0.176776692 : f32
    %418 = arith.mulf %417, %cst_246 : f32
    %419 = vector.broadcast %418 : f32 to vector<8x16xf32>
    %420 = arith.select %416, %419, %402 : vector<8x16xi1>, vector<8x16xf32>
    %c21_247 = arith.constant 21 : index
    %c1_248 = arith.constant 1 : index
    %421 = memref.load %arg1[%c21_247, %c1_248] : memref<32x4xf32, #tpu.memory_space<smem>>
    %cst_249 = arith.constant 0.176776692 : f32
    %422 = arith.mulf %421, %cst_249 : f32
    %423 = vector.broadcast %422 : f32 to vector<8x16xf32>
    %424 = arith.select %416, %423, %406 : vector<8x16xi1>, vector<8x16xf32>
    %c21_250 = arith.constant 21 : index
    %c2_251 = arith.constant 2 : index
    %425 = memref.load %arg1[%c21_250, %c2_251] : memref<32x4xf32, #tpu.memory_space<smem>>
    %cst_252 = arith.constant 0.176776692 : f32
    %426 = arith.mulf %425, %cst_252 : f32
    %427 = vector.broadcast %426 : f32 to vector<8x16xf32>
    %428 = arith.select %416, %427, %410 : vector<8x16xi1>, vector<8x16xf32>
    %c21_253 = arith.constant 21 : index
    %c3_254 = arith.constant 3 : index
    %429 = memref.load %arg1[%c21_253, %c3_254] : memref<32x4xf32, #tpu.memory_space<smem>>
    %cst_255 = arith.constant 0.176776692 : f32
    %430 = arith.mulf %429, %cst_255 : f32
    %431 = vector.broadcast %430 : f32 to vector<8x16xf32>
    %432 = arith.select %416, %431, %414 : vector<8x16xi1>, vector<8x16xf32>
    %c22_i32 = arith.constant 22 : i32
    %433 = vector.broadcast %c22_i32 : i32 to vector<8x16xi32>
    %434 = arith.cmpi eq, %32, %433 : vector<8x16xi32>
    %c22 = arith.constant 22 : index
    %c0_256 = arith.constant 0 : index
    %435 = memref.load %arg1[%c22, %c0_256] : memref<32x4xf32, #tpu.memory_space<smem>>
    %cst_257 = arith.constant 0.176776692 : f32
    %436 = arith.mulf %435, %cst_257 : f32
    %437 = vector.broadcast %436 : f32 to vector<8x16xf32>
    %438 = arith.select %434, %437, %420 : vector<8x16xi1>, vector<8x16xf32>
    %c22_258 = arith.constant 22 : index
    %c1_259 = arith.constant 1 : index
    %439 = memref.load %arg1[%c22_258, %c1_259] : memref<32x4xf32, #tpu.memory_space<smem>>
    %cst_260 = arith.constant 0.176776692 : f32
    %440 = arith.mulf %439, %cst_260 : f32
    %441 = vector.broadcast %440 : f32 to vector<8x16xf32>
    %442 = arith.select %434, %441, %424 : vector<8x16xi1>, vector<8x16xf32>
    %c22_261 = arith.constant 22 : index
    %c2_262 = arith.constant 2 : index
    %443 = memref.load %arg1[%c22_261, %c2_262] : memref<32x4xf32, #tpu.memory_space<smem>>
    %cst_263 = arith.constant 0.176776692 : f32
    %444 = arith.mulf %443, %cst_263 : f32
    %445 = vector.broadcast %444 : f32 to vector<8x16xf32>
    %446 = arith.select %434, %445, %428 : vector<8x16xi1>, vector<8x16xf32>
    %c22_264 = arith.constant 22 : index
    %c3_265 = arith.constant 3 : index
    %447 = memref.load %arg1[%c22_264, %c3_265] : memref<32x4xf32, #tpu.memory_space<smem>>
    %cst_266 = arith.constant 0.176776692 : f32
    %448 = arith.mulf %447, %cst_266 : f32
    %449 = vector.broadcast %448 : f32 to vector<8x16xf32>
    %450 = arith.select %434, %449, %432 : vector<8x16xi1>, vector<8x16xf32>
    %c23_i32 = arith.constant 23 : i32
    %451 = vector.broadcast %c23_i32 : i32 to vector<8x16xi32>
    %452 = arith.cmpi eq, %32, %451 : vector<8x16xi32>
    %c23 = arith.constant 23 : index
    %c0_267 = arith.constant 0 : index
    %453 = memref.load %arg1[%c23, %c0_267] : memref<32x4xf32, #tpu.memory_space<smem>>
    %cst_268 = arith.constant 0.176776692 : f32
    %454 = arith.mulf %453, %cst_268 : f32
    %455 = vector.broadcast %454 : f32 to vector<8x16xf32>
    %456 = arith.select %452, %455, %438 : vector<8x16xi1>, vector<8x16xf32>
    %c23_269 = arith.constant 23 : index
    %c1_270 = arith.constant 1 : index
    %457 = memref.load %arg1[%c23_269, %c1_270] : memref<32x4xf32, #tpu.memory_space<smem>>
    %cst_271 = arith.constant 0.176776692 : f32
    %458 = arith.mulf %457, %cst_271 : f32
    %459 = vector.broadcast %458 : f32 to vector<8x16xf32>
    %460 = arith.select %452, %459, %442 : vector<8x16xi1>, vector<8x16xf32>
    %c23_272 = arith.constant 23 : index
    %c2_273 = arith.constant 2 : index
    %461 = memref.load %arg1[%c23_272, %c2_273] : memref<32x4xf32, #tpu.memory_space<smem>>
    %cst_274 = arith.constant 0.176776692 : f32
    %462 = arith.mulf %461, %cst_274 : f32
    %463 = vector.broadcast %462 : f32 to vector<8x16xf32>
    %464 = arith.select %452, %463, %446 : vector<8x16xi1>, vector<8x16xf32>
    %c23_275 = arith.constant 23 : index
    %c3_276 = arith.constant 3 : index
    %465 = memref.load %arg1[%c23_275, %c3_276] : memref<32x4xf32, #tpu.memory_space<smem>>
    %cst_277 = arith.constant 0.176776692 : f32
    %466 = arith.mulf %465, %cst_277 : f32
    %467 = vector.broadcast %466 : f32 to vector<8x16xf32>
    %468 = arith.select %452, %467, %450 : vector<8x16xi1>, vector<8x16xf32>
    %c24_i32 = arith.constant 24 : i32
    %469 = vector.broadcast %c24_i32 : i32 to vector<8x16xi32>
    %470 = arith.cmpi eq, %32, %469 : vector<8x16xi32>
    %c24 = arith.constant 24 : index
    %c0_278 = arith.constant 0 : index
    %471 = memref.load %arg1[%c24, %c0_278] : memref<32x4xf32, #tpu.memory_space<smem>>
    %cst_279 = arith.constant 0.176776692 : f32
    %472 = arith.mulf %471, %cst_279 : f32
    %473 = vector.broadcast %472 : f32 to vector<8x16xf32>
    %474 = arith.select %470, %473, %456 : vector<8x16xi1>, vector<8x16xf32>
    %c24_280 = arith.constant 24 : index
    %c1_281 = arith.constant 1 : index
    %475 = memref.load %arg1[%c24_280, %c1_281] : memref<32x4xf32, #tpu.memory_space<smem>>
    %cst_282 = arith.constant 0.176776692 : f32
    %476 = arith.mulf %475, %cst_282 : f32
    %477 = vector.broadcast %476 : f32 to vector<8x16xf32>
    %478 = arith.select %470, %477, %460 : vector<8x16xi1>, vector<8x16xf32>
    %c24_283 = arith.constant 24 : index
    %c2_284 = arith.constant 2 : index
    %479 = memref.load %arg1[%c24_283, %c2_284] : memref<32x4xf32, #tpu.memory_space<smem>>
    %cst_285 = arith.constant 0.176776692 : f32
    %480 = arith.mulf %479, %cst_285 : f32
    %481 = vector.broadcast %480 : f32 to vector<8x16xf32>
    %482 = arith.select %470, %481, %464 : vector<8x16xi1>, vector<8x16xf32>
    %c24_286 = arith.constant 24 : index
    %c3_287 = arith.constant 3 : index
    %483 = memref.load %arg1[%c24_286, %c3_287] : memref<32x4xf32, #tpu.memory_space<smem>>
    %cst_288 = arith.constant 0.176776692 : f32
    %484 = arith.mulf %483, %cst_288 : f32
    %485 = vector.broadcast %484 : f32 to vector<8x16xf32>
    %486 = arith.select %470, %485, %468 : vector<8x16xi1>, vector<8x16xf32>
    %c25_i32 = arith.constant 25 : i32
    %487 = vector.broadcast %c25_i32 : i32 to vector<8x16xi32>
    %488 = arith.cmpi eq, %32, %487 : vector<8x16xi32>
    %c25 = arith.constant 25 : index
    %c0_289 = arith.constant 0 : index
    %489 = memref.load %arg1[%c25, %c0_289] : memref<32x4xf32, #tpu.memory_space<smem>>
    %cst_290 = arith.constant 0.176776692 : f32
    %490 = arith.mulf %489, %cst_290 : f32
    %491 = vector.broadcast %490 : f32 to vector<8x16xf32>
    %492 = arith.select %488, %491, %474 : vector<8x16xi1>, vector<8x16xf32>
    %c25_291 = arith.constant 25 : index
    %c1_292 = arith.constant 1 : index
    %493 = memref.load %arg1[%c25_291, %c1_292] : memref<32x4xf32, #tpu.memory_space<smem>>
    %cst_293 = arith.constant 0.176776692 : f32
    %494 = arith.mulf %493, %cst_293 : f32
    %495 = vector.broadcast %494 : f32 to vector<8x16xf32>
    %496 = arith.select %488, %495, %478 : vector<8x16xi1>, vector<8x16xf32>
    %c25_294 = arith.constant 25 : index
    %c2_295 = arith.constant 2 : index
    %497 = memref.load %arg1[%c25_294, %c2_295] : memref<32x4xf32, #tpu.memory_space<smem>>
    %cst_296 = arith.constant 0.176776692 : f32
    %498 = arith.mulf %497, %cst_296 : f32
    %499 = vector.broadcast %498 : f32 to vector<8x16xf32>
    %500 = arith.select %488, %499, %482 : vector<8x16xi1>, vector<8x16xf32>
    %c25_297 = arith.constant 25 : index
    %c3_298 = arith.constant 3 : index
    %501 = memref.load %arg1[%c25_297, %c3_298] : memref<32x4xf32, #tpu.memory_space<smem>>
    %cst_299 = arith.constant 0.176776692 : f32
    %502 = arith.mulf %501, %cst_299 : f32
    %503 = vector.broadcast %502 : f32 to vector<8x16xf32>
    %504 = arith.select %488, %503, %486 : vector<8x16xi1>, vector<8x16xf32>
    %c26_i32 = arith.constant 26 : i32
    %505 = vector.broadcast %c26_i32 : i32 to vector<8x16xi32>
    %506 = arith.cmpi eq, %32, %505 : vector<8x16xi32>
    %c26 = arith.constant 26 : index
    %c0_300 = arith.constant 0 : index
    %507 = memref.load %arg1[%c26, %c0_300] : memref<32x4xf32, #tpu.memory_space<smem>>
    %cst_301 = arith.constant 0.176776692 : f32
    %508 = arith.mulf %507, %cst_301 : f32
    %509 = vector.broadcast %508 : f32 to vector<8x16xf32>
    %510 = arith.select %506, %509, %492 : vector<8x16xi1>, vector<8x16xf32>
    %c26_302 = arith.constant 26 : index
    %c1_303 = arith.constant 1 : index
    %511 = memref.load %arg1[%c26_302, %c1_303] : memref<32x4xf32, #tpu.memory_space<smem>>
    %cst_304 = arith.constant 0.176776692 : f32
    %512 = arith.mulf %511, %cst_304 : f32
    %513 = vector.broadcast %512 : f32 to vector<8x16xf32>
    %514 = arith.select %506, %513, %496 : vector<8x16xi1>, vector<8x16xf32>
    %c26_305 = arith.constant 26 : index
    %c2_306 = arith.constant 2 : index
    %515 = memref.load %arg1[%c26_305, %c2_306] : memref<32x4xf32, #tpu.memory_space<smem>>
    %cst_307 = arith.constant 0.176776692 : f32
    %516 = arith.mulf %515, %cst_307 : f32
    %517 = vector.broadcast %516 : f32 to vector<8x16xf32>
    %518 = arith.select %506, %517, %500 : vector<8x16xi1>, vector<8x16xf32>
    %c26_308 = arith.constant 26 : index
    %c3_309 = arith.constant 3 : index
    %519 = memref.load %arg1[%c26_308, %c3_309] : memref<32x4xf32, #tpu.memory_space<smem>>
    %cst_310 = arith.constant 0.176776692 : f32
    %520 = arith.mulf %519, %cst_310 : f32
    %521 = vector.broadcast %520 : f32 to vector<8x16xf32>
    %522 = arith.select %506, %521, %504 : vector<8x16xi1>, vector<8x16xf32>
    %c27_i32 = arith.constant 27 : i32
    %523 = vector.broadcast %c27_i32 : i32 to vector<8x16xi32>
    %524 = arith.cmpi eq, %32, %523 : vector<8x16xi32>
    %c27 = arith.constant 27 : index
    %c0_311 = arith.constant 0 : index
    %525 = memref.load %arg1[%c27, %c0_311] : memref<32x4xf32, #tpu.memory_space<smem>>
    %cst_312 = arith.constant 0.176776692 : f32
    %526 = arith.mulf %525, %cst_312 : f32
    %527 = vector.broadcast %526 : f32 to vector<8x16xf32>
    %528 = arith.select %524, %527, %510 : vector<8x16xi1>, vector<8x16xf32>
    %c27_313 = arith.constant 27 : index
    %c1_314 = arith.constant 1 : index
    %529 = memref.load %arg1[%c27_313, %c1_314] : memref<32x4xf32, #tpu.memory_space<smem>>
    %cst_315 = arith.constant 0.176776692 : f32
    %530 = arith.mulf %529, %cst_315 : f32
    %531 = vector.broadcast %530 : f32 to vector<8x16xf32>
    %532 = arith.select %524, %531, %514 : vector<8x16xi1>, vector<8x16xf32>
    %c27_316 = arith.constant 27 : index
    %c2_317 = arith.constant 2 : index
    %533 = memref.load %arg1[%c27_316, %c2_317] : memref<32x4xf32, #tpu.memory_space<smem>>
    %cst_318 = arith.constant 0.176776692 : f32
    %534 = arith.mulf %533, %cst_318 : f32
    %535 = vector.broadcast %534 : f32 to vector<8x16xf32>
    %536 = arith.select %524, %535, %518 : vector<8x16xi1>, vector<8x16xf32>
    %c27_319 = arith.constant 27 : index
    %c3_320 = arith.constant 3 : index
    %537 = memref.load %arg1[%c27_319, %c3_320] : memref<32x4xf32, #tpu.memory_space<smem>>
    %cst_321 = arith.constant 0.176776692 : f32
    %538 = arith.mulf %537, %cst_321 : f32
    %539 = vector.broadcast %538 : f32 to vector<8x16xf32>
    %540 = arith.select %524, %539, %522 : vector<8x16xi1>, vector<8x16xf32>
    %c28_i32 = arith.constant 28 : i32
    %541 = vector.broadcast %c28_i32 : i32 to vector<8x16xi32>
    %542 = arith.cmpi eq, %32, %541 : vector<8x16xi32>
    %c28 = arith.constant 28 : index
    %c0_322 = arith.constant 0 : index
    %543 = memref.load %arg1[%c28, %c0_322] : memref<32x4xf32, #tpu.memory_space<smem>>
    %cst_323 = arith.constant 0.176776692 : f32
    %544 = arith.mulf %543, %cst_323 : f32
    %545 = vector.broadcast %544 : f32 to vector<8x16xf32>
    %546 = arith.select %542, %545, %528 : vector<8x16xi1>, vector<8x16xf32>
    %c28_324 = arith.constant 28 : index
    %c1_325 = arith.constant 1 : index
    %547 = memref.load %arg1[%c28_324, %c1_325] : memref<32x4xf32, #tpu.memory_space<smem>>
    %cst_326 = arith.constant 0.176776692 : f32
    %548 = arith.mulf %547, %cst_326 : f32
    %549 = vector.broadcast %548 : f32 to vector<8x16xf32>
    %550 = arith.select %542, %549, %532 : vector<8x16xi1>, vector<8x16xf32>
    %c28_327 = arith.constant 28 : index
    %c2_328 = arith.constant 2 : index
    %551 = memref.load %arg1[%c28_327, %c2_328] : memref<32x4xf32, #tpu.memory_space<smem>>
    %cst_329 = arith.constant 0.176776692 : f32
    %552 = arith.mulf %551, %cst_329 : f32
    %553 = vector.broadcast %552 : f32 to vector<8x16xf32>
    %554 = arith.select %542, %553, %536 : vector<8x16xi1>, vector<8x16xf32>
    %c28_330 = arith.constant 28 : index
    %c3_331 = arith.constant 3 : index
    %555 = memref.load %arg1[%c28_330, %c3_331] : memref<32x4xf32, #tpu.memory_space<smem>>
    %cst_332 = arith.constant 0.176776692 : f32
    %556 = arith.mulf %555, %cst_332 : f32
    %557 = vector.broadcast %556 : f32 to vector<8x16xf32>
    %558 = arith.select %542, %557, %540 : vector<8x16xi1>, vector<8x16xf32>
    %c29_i32 = arith.constant 29 : i32
    %559 = vector.broadcast %c29_i32 : i32 to vector<8x16xi32>
    %560 = arith.cmpi eq, %32, %559 : vector<8x16xi32>
    %c29 = arith.constant 29 : index
    %c0_333 = arith.constant 0 : index
    %561 = memref.load %arg1[%c29, %c0_333] : memref<32x4xf32, #tpu.memory_space<smem>>
    %cst_334 = arith.constant 0.176776692 : f32
    %562 = arith.mulf %561, %cst_334 : f32
    %563 = vector.broadcast %562 : f32 to vector<8x16xf32>
    %564 = arith.select %560, %563, %546 : vector<8x16xi1>, vector<8x16xf32>
    %c29_335 = arith.constant 29 : index
    %c1_336 = arith.constant 1 : index
    %565 = memref.load %arg1[%c29_335, %c1_336] : memref<32x4xf32, #tpu.memory_space<smem>>
    %cst_337 = arith.constant 0.176776692 : f32
    %566 = arith.mulf %565, %cst_337 : f32
    %567 = vector.broadcast %566 : f32 to vector<8x16xf32>
    %568 = arith.select %560, %567, %550 : vector<8x16xi1>, vector<8x16xf32>
    %c29_338 = arith.constant 29 : index
    %c2_339 = arith.constant 2 : index
    %569 = memref.load %arg1[%c29_338, %c2_339] : memref<32x4xf32, #tpu.memory_space<smem>>
    %cst_340 = arith.constant 0.176776692 : f32
    %570 = arith.mulf %569, %cst_340 : f32
    %571 = vector.broadcast %570 : f32 to vector<8x16xf32>
    %572 = arith.select %560, %571, %554 : vector<8x16xi1>, vector<8x16xf32>
    %c29_341 = arith.constant 29 : index
    %c3_342 = arith.constant 3 : index
    %573 = memref.load %arg1[%c29_341, %c3_342] : memref<32x4xf32, #tpu.memory_space<smem>>
    %cst_343 = arith.constant 0.176776692 : f32
    %574 = arith.mulf %573, %cst_343 : f32
    %575 = vector.broadcast %574 : f32 to vector<8x16xf32>
    %576 = arith.select %560, %575, %558 : vector<8x16xi1>, vector<8x16xf32>
    %c30_i32 = arith.constant 30 : i32
    %577 = vector.broadcast %c30_i32 : i32 to vector<8x16xi32>
    %578 = arith.cmpi eq, %32, %577 : vector<8x16xi32>
    %c30 = arith.constant 30 : index
    %c0_344 = arith.constant 0 : index
    %579 = memref.load %arg1[%c30, %c0_344] : memref<32x4xf32, #tpu.memory_space<smem>>
    %cst_345 = arith.constant 0.176776692 : f32
    %580 = arith.mulf %579, %cst_345 : f32
    %581 = vector.broadcast %580 : f32 to vector<8x16xf32>
    %582 = arith.select %578, %581, %564 : vector<8x16xi1>, vector<8x16xf32>
    %c30_346 = arith.constant 30 : index
    %c1_347 = arith.constant 1 : index
    %583 = memref.load %arg1[%c30_346, %c1_347] : memref<32x4xf32, #tpu.memory_space<smem>>
    %cst_348 = arith.constant 0.176776692 : f32
    %584 = arith.mulf %583, %cst_348 : f32
    %585 = vector.broadcast %584 : f32 to vector<8x16xf32>
    %586 = arith.select %578, %585, %568 : vector<8x16xi1>, vector<8x16xf32>
    %c30_349 = arith.constant 30 : index
    %c2_350 = arith.constant 2 : index
    %587 = memref.load %arg1[%c30_349, %c2_350] : memref<32x4xf32, #tpu.memory_space<smem>>
    %cst_351 = arith.constant 0.176776692 : f32
    %588 = arith.mulf %587, %cst_351 : f32
    %589 = vector.broadcast %588 : f32 to vector<8x16xf32>
    %590 = arith.select %578, %589, %572 : vector<8x16xi1>, vector<8x16xf32>
    %c30_352 = arith.constant 30 : index
    %c3_353 = arith.constant 3 : index
    %591 = memref.load %arg1[%c30_352, %c3_353] : memref<32x4xf32, #tpu.memory_space<smem>>
    %cst_354 = arith.constant 0.176776692 : f32
    %592 = arith.mulf %591, %cst_354 : f32
    %593 = vector.broadcast %592 : f32 to vector<8x16xf32>
    %594 = arith.select %578, %593, %576 : vector<8x16xi1>, vector<8x16xf32>
    %c31_i32 = arith.constant 31 : i32
    %595 = vector.broadcast %c31_i32 : i32 to vector<8x16xi32>
    %596 = arith.cmpi eq, %32, %595 : vector<8x16xi32>
    %c31 = arith.constant 31 : index
    %c0_355 = arith.constant 0 : index
    %597 = memref.load %arg1[%c31, %c0_355] : memref<32x4xf32, #tpu.memory_space<smem>>
    %cst_356 = arith.constant 0.176776692 : f32
    %598 = arith.mulf %597, %cst_356 : f32
    %599 = vector.broadcast %598 : f32 to vector<8x16xf32>
    %600 = arith.select %596, %599, %582 : vector<8x16xi1>, vector<8x16xf32>
    %c31_357 = arith.constant 31 : index
    %c1_358 = arith.constant 1 : index
    %601 = memref.load %arg1[%c31_357, %c1_358] : memref<32x4xf32, #tpu.memory_space<smem>>
    %cst_359 = arith.constant 0.176776692 : f32
    %602 = arith.mulf %601, %cst_359 : f32
    %603 = vector.broadcast %602 : f32 to vector<8x16xf32>
    %604 = arith.select %596, %603, %586 : vector<8x16xi1>, vector<8x16xf32>
    %c31_360 = arith.constant 31 : index
    %c2_361 = arith.constant 2 : index
    %605 = memref.load %arg1[%c31_360, %c2_361] : memref<32x4xf32, #tpu.memory_space<smem>>
    %cst_362 = arith.constant 0.176776692 : f32
    %606 = arith.mulf %605, %cst_362 : f32
    %607 = vector.broadcast %606 : f32 to vector<8x16xf32>
    %608 = arith.select %596, %607, %590 : vector<8x16xi1>, vector<8x16xf32>
    %c31_363 = arith.constant 31 : index
    %c3_364 = arith.constant 3 : index
    %609 = memref.load %arg1[%c31_363, %c3_364] : memref<32x4xf32, #tpu.memory_space<smem>>
    %cst_365 = arith.constant 0.176776692 : f32
    %610 = arith.mulf %609, %cst_365 : f32
    %611 = vector.broadcast %610 : f32 to vector<8x16xf32>
    %612 = arith.select %596, %611, %594 : vector<8x16xi1>, vector<8x16xf32>
    %c0_366 = arith.constant 0 : index
    %c0_367 = arith.constant 0 : index
    %c0_368 = arith.constant 0 : index
    %613 = vector.load %arg2[%c0_366, %c0_367, %c0_368] : memref<4x8x16xf32, #tpu.memory_space<vmem>>, vector<1x8x16xf32>
    %614 = vector.shape_cast %613 : vector<1x8x16xf32> to vector<8x16xf32>
    %615 = vector.shape_cast %600 : vector<8x16xf32> to vector<1x8x16xf32>
    tpu.vector_store %arg2[%c0_366, %c0_367, %c0_368], %615 {strides = array<i32>} : memref<4x8x16xf32, #tpu.memory_space<vmem>>, vector<1x8x16xf32>,
    %c1_369 = arith.constant 1 : index
    %c0_370 = arith.constant 0 : index
    %c0_371 = arith.constant 0 : index
    %616 = vector.load %arg2[%c1_369, %c0_370, %c0_371] : memref<4x8x16xf32, #tpu.memory_space<vmem>>, vector<1x8x16xf32>
    %617 = vector.shape_cast %616 : vector<1x8x16xf32> to vector<8x16xf32>
    %618 = vector.shape_cast %604 : vector<8x16xf32> to vector<1x8x16xf32>
    tpu.vector_store %arg2[%c1_369, %c0_370, %c0_371], %618 {strides = array<i32>} : memref<4x8x16xf32, #tpu.memory_space<vmem>>, vector<1x8x16xf32>,
    %c2_372 = arith.constant 2 : index
    %c0_373 = arith.constant 0 : index
    %c0_374 = arith.constant 0 : index
    %619 = vector.load %arg2[%c2_372, %c0_373, %c0_374] : memref<4x8x16xf32, #tpu.memory_space<vmem>>, vector<1x8x16xf32>
    %620 = vector.shape_cast %619 : vector<1x8x16xf32> to vector<8x16xf32>
    %621 = vector.shape_cast %608 : vector<8x16xf32> to vector<1x8x16xf32>
    tpu.vector_store %arg2[%c2_372, %c0_373, %c0_374], %621 {strides = array<i32>} : memref<4x8x16xf32, #tpu.memory_space<vmem>>, vector<1x8x16xf32>,
    %c3_375 = arith.constant 3 : index
    %c0_376 = arith.constant 0 : index
    %c0_377 = arith.constant 0 : index
    %622 = vector.load %arg2[%c3_375, %c0_376, %c0_377] : memref<4x8x16xf32, #tpu.memory_space<vmem>>, vector<1x8x16xf32>
    %623 = vector.shape_cast %622 : vector<1x8x16xf32> to vector<8x16xf32>
    %624 = vector.shape_cast %612 : vector<8x16xf32> to vector<1x8x16xf32>
    tpu.vector_store %arg2[%c3_375, %c0_376, %c0_377], %624 {strides = array<i32>} : memref<4x8x16xf32, #tpu.memory_space<vmem>>, vector<1x8x16xf32>,
    return
  }
  func.func @transform_0(%arg0: i32) -> (i32, i32) {
    %c0_i32 = arith.constant 0 : i32
    %c0_i32_0 = arith.constant 0 : i32
    %c0_i32_1 = arith.constant 0 : i32
    return %c0_i32, %c0_i32_0 : i32, i32
  }
  func.func @transform_1(%arg0: i32) -> (i32, i32, i32) {
    %c0_i32 = arith.constant 0 : i32
    %c0_i32_0 = arith.constant 0 : i32
    %c0_i32_1 = arith.constant 0 : i32
    return %c0_i32, %arg0, %c0_i32_0 : i32, i32, i32
  }
}

</mosaic_0001>

<bundles_post_ra>
// kernel: tpu_custom_call.1
= control target key start
LH: loop header
LB: loop body
LE: loop exit
PB: predicated region body
PF: predicated region fallthrough
CT: control target
= control target key end

     0   :  { %s2071_s0 = inlined_call_operand.vmem [shape: f32[32,4], index: 0, kind: input, shape index: {}]   ;;  %s2072_s1 = inlined_call_operand.hbm [shape: f32[4,16,16], index: 1, kind: output, shape index: {}]  }
   0x1   :  { %2111 = sst [smem:[#allocation38_spill]] %s2071_s0 }
   0x2   :  { %2112 = sst [smem:[#allocation39_spill]] %s2072_s1 }
   0x3   :  { %6 = vsyncpa [#allocation4], 0 }
   0x4   :  { %7 = vsyncpa [#allocation3], 0 }
   0x5   :  { %9 = vsyncpa [#allocation3 + $0x1], 0  ;;  %s1068_s6 = smov 0   ;;  %s1070_s7 = smov 0  }
   0x6   :  { %s1072_s8 = smov 0   ;;  %s1074_s9 = smov 0  }
   0x7 LB: > { %2113 = sst [smem:[#allocation8_spill]] %s1036_s6  ;;  %s1089_s10 = sadd.s32 4294967295, %s1048_s9   ;;  %s1048_s9 = sphi %s1074_s9, %s2270_s9   ;;  %s1044_s8 = sphi %s1072_s8, %s2273_s8   ;;  %s1040_s7 = sphi %s1070_s7, %s2272_s7   ;;  %s1036_s6 = sphi %s1068_s6, %s2271_s6  }
   0x8   : > { %2114 = sst [smem:[#allocation9_spill]] %s1040_s7  ;;  %s767_s11 = sadd.s32 4294967294, %s1048_s9  }
   0x9   : > { %2115 = sst [smem:[#allocation10_spill]] %s1044_s8  ;;  %s1093_s12 = sadd.s32 1, %s1048_s9  }
   0xa   : > { %2116 = sst [smem:[#allocation11_spill]] %s1048_s9  ;;  %s43_s13 = sadd.s32 1, %s1044_s8 }
   0xb   : > { %2117 = sst [smem:[#allocation12_spill]] %s1089_s10  ;;  %s40_s14 = ssub.s32 %s1048_s9, %s1093_s12 }
   0xc   : > { %2118 = sst [smem:[#allocation13_spill]] %s1093_s12  ;;  %p53_p0 = scmp.ne.s32.totalorder %s1044_s8, %s1040_s7 }
   0xd   : > { %p41_p1 = scmp.eq.s32.totalorder %s40_s14, 0  ;;  %p54_p2 = scmp.eq.s32.totalorder %s1089_s10, 1 }
   0xe   : > { %p59_p3 = scmp.ne.s32.totalorder %s1040_s7, %s1036_s6  ;;  %p60_p4 = scmp.eq.s32.totalorder %s767_s11, 1 }
   0xf   : > { %s1104_s15 = scalar_select %p41_p1, %s1044_s8, %s43_s13  }
  0x10   : > { %p1106_p5 = por %p54_p2, %p53_p0  ;;  %p1110_p6 = por %p60_p4, %p59_p3 }
  0x11   : > { %2119 = sst [smem:[#allocation14_spill]] %s1104_s15  ;;  %p768_p7 = scmp.ge.s32.totalorder %s1048_s9, 1 }
  0x12   : > { %s2120_s16 = scalar_select %p1106_p5, 1, 0 }
  0x13   : > { %s2122_s17 = scalar_select %p1110_p6, 1, 0 }
  0x14   : > { %2121 = sst [smem:[#allocation15_spill]] %s2120_s16  ;;  %p67_p8 = scmp.lt.s32.totalorder %s1048_s9, 3 }
  0x15   : > { %2123 = sst [smem:[#allocation16_spill]] %s2122_s17  ;;  %p925_p9 = scmp.eq.s32.totalorder %s1089_s10, 0 }
  0x16   : > { %p1117_p10 = pnand %p768_p7, %p67_p8  ;;  %s2125_s0 = sld [smem:[#allocation38_spill]] }
  0x18   : > { %p917_p11 = pneg %p1117_p10 }
  0x1a   : > { %p1128_p12 = pnand %p925_p9, %p917_p11 }
  0x1c   : > { %s79_s21 = sshll.u32 %s2125_s0, 4  ;;  %p971_p0 = pneg %p1128_p12  ;;  %s80_s21 = int_to_ptr.vmem [resolvable:$true] %s79_s21 }
  0x1d   : > { %s969_s23 = scalar_lea.vmem %s80_s21, 512  ;;  %p977_p3 = scmp.lt.s32.totalorder %s80_s21, %s80_s21 }
  0x1e   : > { %p970_p13 = scmp.ne.s32.totalorder %s80_s21, %s969_s23  ;;  %p978_p4 = scmp.lt.s32.totalorder %s969_s23, %s969_s23 }
  0x20   : > { %p972_p1 = pnand %p971_p0, %p970_p13  ;;  %p979_p7 = por %p978_p4, %p977_p3 }
  0x22   : > { %p973_p2 = pneg %p972_p1 }
  0x24   : > { %p980_p8 = pnand %p979_p7, %p973_p2 }
  0x26   : > { %983 = shalt.err (!%p980_p8)
}
  0x27   : > { %s1050_s24 = smov [#allocation2]   ;;  %s1051_s25 = smov 128  }
  0x28   : > { %s1052_s26 = smov 8   ;;  %95 = sbr.rel (%p1117_p10) target bundleno = 274 (0x112), region = 24 }
  0x29   : > { %920 = dma.vmem_to_smem (!%p1128_p12), %s80_s21, 512, %s1050_s24, [#allocation4], %s1051_s25, %s1051_s25, %s1052_s26  }
  0x2d   : > { %1027 = dma.done.wait (%p925_p9), [#allocation4], 512  }
  0x2e   : > { %1029 = vsyncadd (%p925_p9), [#allocation4], 4294966784 }
  0x2f   : > { %101 = sfence }
  0x30   : > { %s773_s27 = sshll.u32 %s1089_s10, 3  ;;  %v112_v0 = vlaneseq  ;;  %s1143_s28 = sld [smem:[#allocation2]]  ;;  %v1053_v16 = vmov 0  }
  0x31   : > { %v114_v1 = vstv %s773_s27  ;;  %s1145_s29 = sld [smem:[#allocation2 + $0x1]] }
  0x32   : > { %v113_v2 = vshrl.u32 %v112_v0, 7  ;;  %v117_v3 = vand.u32 127, %v112_v0  ;;  %s1147_s30 = sld [smem:[#allocation2 + $0x2]] }
  0x33   : > { %s1149_s2 = sld [smem:[#allocation2 + $0x3]] }
  0x34   : > { %v115_v4 = vadd.s32 %v114_v1, %v113_v2  ;;  %s1151_s3 = sld [smem:[#allocation2 + $0x80]] }
  0x35   : > { %s1155_s4 = sld [smem:[#allocation2 + $0x81]] }
  0x36   : > { %v1153_v5 = vsub.s32 %v115_v4, %v117_v3  ;;  %s1157_s5 = sld [smem:[#allocation2 + $0x82]] }
  0x37   : > { %s1160_s11 = sld [smem:[#allocation2 + $0x83]] }
  0x38   : > { %v122_v6 = vsub.s32 0, %v1153_v5  ;;  %s1163_s14 = sld [smem:[#allocation2 + $0x100]]  ;;  %vm119_vm0 = vcmp.lt.s32.totalorder %v1153_v5, 0 }
  0x39   : > { %s1169_s19 = sld [smem:[#allocation2 + $0x101]]  ;;  %v120_v17 = vsel %vm119_vm0, 1, %v1053_v16 }
  0x3a   : > { %v1166_v7 = vmin.u32 %v122_v6, %v1153_v5  ;;  %s1172_s21 = sld [smem:[#allocation2 + $0x102]]  ;;  %v121_v20 = vmul.u32 16, %v120_v17 }
  0x3b   : > { %s1176_s23 = sld [smem:[#allocation2 + $0x103]] }
  0x3c   : > { %v125_v8 = vcvt.s32.f32 %v1166_v7  ;;  %s1179_s25 = sld [smem:[#allocation2 + $0x180]]  ;;  %vm124_vm1 = vcmp.lt.s32.totalorder %v1166_v7, 8 }
  0x3d   : > { %s1182_s27 = sld [smem:[#allocation2 + $0x181]] }
  0x3e   : > { %v126_v9 = vmax.f32 %v125_v8, 1.0  ;;  %s1185_s20 = sld [smem:[#allocation2 + $0x182]] }
  0x3f   : > { %s1188_s22 = sld [smem:[#allocation2 + $0x183]] }
  0x40   : > { %v128_v10 = vmul.f32 0.125, %v126_v9  ;;  %s1191_s24 = sld [smem:[#allocation2 + $0x200]] }
  0x41   : > { %s1194_s26 = sld [smem:[#allocation2 + $0x201]] }
  0x42   : > { %2127 = sst [smem:[#allocation17_spill]] %s1179_s25  ;;  %967 = vlog2.f32 %v128_v10 }
  0x43   : > { %2128 = sst [smem:[#allocation18_spill]] %s1182_s27 }
  0x44   : > { %2129 = sst [smem:[#allocation19_spill]] %s1185_s20  ;;  %s2148_s20 = smul.f32 0.17677669, %s1145_s29 }
  0x45   : > { %2130 = sst [smem:[#allocation20_spill]] %s1188_s22 }
  0x46   : > { %s1197_s18 = sld [smem:[#allocation2 + $0x202]]  ;;  %v147_v23 = vstv %s2148_s20  ;;  %s2155_s20 = smul.f32 0.17677669, %s1160_s11 }
  0x47   : > { %2131 = sst [smem:[#allocation21_spill]] %s1194_s26 }
  0x48   : > { %s1200_s17 = sld [smem:[#allocation2 + $0x203]]  ;;  %v172_v31 = vstv %s2155_s20 }
  0x49   : > { %s1203_s6 = sld [smem:[#allocation2 + $0x280]] }
  0x4a   : > { %s1206_s9 = sld [smem:[#allocation2 + $0x281]] }
  0x4b   : > { %s1209_s1 = sld [smem:[#allocation2 + $0x282]] }
  0x4c   : > { %2132 = sst [smem:[#allocation22_spill]] %s1197_s18 }
  0x4d   : > { %s1212_s16 = sld [smem:[#allocation2 + $0x283]] }
  0x4e   : > { %2133 = sst [smem:[#allocation23_spill]] %s1200_s17 }
  0x4f   : > { %2134 = sst [smem:[#allocation24_spill]] %s1203_s6  ;;  %v968_v11 = vpop.eup %967 }
  0x50   : > { %2135 = sst [smem:[#allocation25_spill]] %s1206_s9  ;;  %v130_v12 = vmul.f32 0.6931472, %v968_v11 }
  0x51   : > { %2136 = sst [smem:[#allocation26_spill]] %s1209_s1 }
  0x52   : > { %s1215_s12 = sld [smem:[#allocation2 + $0x300]]  ;;  %v132_v13 = vmul.f32 0.36067376, %v130_v12 }
  0x53   : > { %s1218_s13 = sld [smem:[#allocation2 + $0x301]] }
  0x54   : > { %s1221_s0 = sld [smem:[#allocation2 + $0x302]]  ;;  %v133_v14 = vmul.f32 8.0, %v132_v13 }
  0x55   : > { %s1224_s15 = sld [smem:[#allocation2 + $0x303]] }
  0x56   : > { %s1227_s8 = sld [smem:[#allocation2 + $0x380]]  ;;  %v909_v15 = vtrunc.f32 %v133_v14 }
  0x57   : > { %s1230_s10 = sld [smem:[#allocation2 + $0x381]] }
  0x58   : > { %s1233_s26 = sld [smem:[#allocation2 + $0x382]]  ;;  %v910_v18 = vcvt.f32.s32 %v909_v15 }
  0x59   : > { %2137 = sst [smem:[#allocation27_spill]] %s1218_s13 }
  0x5a   : > { %2138 = sst [smem:[#allocation28_spill]] %s1221_s0  ;;  %v135_v19 = vadd.s32 8, %v910_v18 }
  0x5b   : > { %s1236_s18 = sld [smem:[#allocation2 + $0x383]] }
  0x5c   : > { %2139 = sst [smem:[#allocation29_spill]] %s1227_s8  ;;  %vm136_vm2 = vcmp.lt.s32.totalorder %v135_v19, 15  ;;  %s2147_s8 = smul.f32 0.17677669, %s1143_s28 }
  0x5d   : > { %2140 = sst [smem:[#allocation30_spill]] %s1230_s10  ;;  %v137_v21 = vsel %vm136_vm2, %v135_v19, 15  ;;  %s2153_s28 = smul.f32 0.17677669, %s1155_s4 }
  0x5e   : > { %2141 = sst [smem:[#allocation31_spill]] %s1233_s26  ;;  %v143_v22 = vstv %s2147_s8  ;;  %v138_v25 = vsel %vm124_vm1, %v1166_v7, %v137_v21  ;;  %s2174_s8 = smul.f32 0.17677669, %s1191_s24 }
  0x5f   : > { %s1239_s17 = sld [smem:[#allocation2 + $0x400]]  ;;  %v164_v28 = vstv %s2153_s28  ;;  %v1291_v29 = vadd.s32 %v138_v25, %v121_v20 }
  0x60   : > { %s1242_s22 = sld [smem:[#allocation2 + $0x401]]  ;;  %v211_v53 = vstv %s2174_s8 }
  0x61   : > { %s1245_s6 = sld [smem:[#allocation2 + $0x402]]  ;;  %vm140_vm3 = vcmp.eq.s32.totalorder %v1291_v29, 0  ;;  %vm157_vm4 = vcmp.eq.s32.totalorder %v1291_v29, 1  ;;  %vm174_vm5 = vcmp.eq.s32.totalorder %v1291_v29, 2  ;;  %vm191_vm6 = vcmp.eq.s32.totalorder %v1291_v29, 3 }
  0x62   : > { %s1248_s1 = sld [smem:[#allocation2 + $0x403]]  ;;  %v144_v37 = vsel %vm140_vm3, %v143_v22, 0.0  ;;  %v148_v38 = vsel %vm140_vm3, %v147_v23, 0.0  ;;  %vm208_vm7 = vcmp.eq.s32.totalorder %v1291_v29, 4  ;;  %vm225_vm8 = vcmp.eq.s32.totalorder %v1291_v29, 5 }
  0x63   : > { %s1252_s25 = sld [smem:[#allocation2 + $0x480]]  ;;  %v165_v42 = vsel %vm157_vm4, %v164_v28, %v148_v38  ;;  %vm242_vm9 = vcmp.eq.s32.totalorder %v1291_v29, 6  ;;  %vm259_vm10 = vcmp.eq.s32.totalorder %v1291_v29, 7  ;;  %vm276_vm11 = vcmp.eq.s32.totalorder %v1291_v29, 8 }
  0x64   : > { %s1255_s13 = sld [smem:[#allocation2 + $0x481]]  ;;  %vm293_vm12 = vcmp.eq.s32.totalorder %v1291_v29, 9  ;;  %vm310_vm13 = vcmp.eq.s32.totalorder %v1291_v29, 10  ;;  %vm327_vm14 = vcmp.eq.s32.totalorder %v1291_v29, 11  ;;  %vm344_vm15 = vcmp.eq.s32.totalorder %v1291_v29, 12 }
  0x65   : > { %2142 = sst [smem:[#allocation32_spill]] %s1239_s17  ;;  %s2152_s17 = smul.f32 0.17677669, %s1151_s3  ;;  %vm361_vm0 = vcmp.eq.s32.totalorder %v1291_v29, 13  ;;  %vm378_vm1 = vcmp.eq.s32.totalorder %v1291_v29, 14  ;;  %vm395_vm2 = vcmp.eq.s32.totalorder %v1291_v29, 15 }
  0x66   : > { %2143 = sst [smem:[#allocation33_spill]] %s1242_s22  ;;  %s2149_s22 = smul.f32 0.17677669, %s1147_s30 }
  0x67   : > { %2144 = sst [smem:[#allocation34_spill]] %s1245_s6  ;;  %v160_v27 = vstv %s2152_s17  ;;  %s2154_s30 = smul.f32 0.17677669, %s1157_s5 }
  0x68   : > { %2145 = sst [smem:[#allocation35_spill]] %s1248_s1  ;;  %v151_v24 = vstv %s2149_s22  ;;  %s2151_s1 = smul.f32 0.17677669, %s1149_s2  ;;  %v161_v41 = vsel %vm157_vm4, %v160_v27, %v144_v37 }
  0x69   : > { %2146 = sst [smem:[#allocation36_spill]] %s1252_s25  ;;  %v168_v30 = vstv %s2154_s30  ;;  %s2156_s22 = smul.f32 0.17677669, %s1163_s14  ;;  %v152_v39 = vsel %vm140_vm3, %v151_v24, 0.0 }
  0x6a   : > { %s1258_s0 = sld [smem:[#allocation2 + $0x482]]  ;;  %v155_v26 = vstv %s2151_s1  ;;  %s2158_s2 = smul.f32 0.17677669, %s1169_s19  ;;  %v169_v43 = vsel %vm157_vm4, %v168_v30, %v152_v39 }
  0x6b   : > { %s1261_s27 = sld [smem:[#allocation2 + $0x483]]  ;;  %v177_v32 = vstv %s2156_s22  ;;  %s2159_s1 = smul.f32 0.17677669, %s1172_s21  ;;  %v156_v40 = vsel %vm140_vm3, %v155_v26, 0.0  ;;  %vm412_vm3 = vcmp.eq.s32.totalorder %v1291_v29, 16 }
  0x6c   : > { %s1267_s26 = sld [smem:[#allocation2 + $0x500]]  ;;  %v181_v33 = vstv %s2158_s2  ;;  %s2160_s17 = smul.f32 0.17677669, %s1176_s23  ;;  %v173_v44 = vsel %vm157_vm4, %v172_v31, %v156_v40  ;;  %v178_v45 = vsel %vm174_vm5, %v177_v32, %v161_v41  ;;  %vm429_vm4 = vcmp.eq.s32.totalorder %v1291_v29, 17 }
  0x6d   : > { %s1270_s7 = sld [smem:[#allocation2 + $0x501]]  ;;  %v185_v34 = vstv %s2159_s1  ;;  %v182_v46 = vsel %vm174_vm5, %v181_v33, %v165_v42 }
  0x6e   : > { %s1279_s6 = sld [smem:[#allocation2 + $0x502]]  ;;  %v189_v35 = vstv %s2160_s17  ;;  %v186_v48 = vsel %vm174_vm5, %v185_v34, %v169_v43 }
  0x6f   : > { %s2150_s10 = sld [smem:[#allocation17_spill]]  ;;  %v190_v49 = vsel %vm174_vm5, %v189_v35, %v173_v44  ;;  %vm446_vm5 = vcmp.eq.s32.totalorder %v1291_v29, 18 }
  0x70   : > { %s1289_s29 = sld [smem:[#allocation2 + $0x503]] }
  0x71   : > { %s1300_s25 = sld [smem:[#allocation2 + $0x580]] }
  0x72   : > { %s1311_s28 = sld [smem:[#allocation2 + $0x581]] }
  0x73   : > { %s2163_s5 = sld [smem:[#allocation18_spill]] }
  0x74   : > { %s1317_s11 = sld [smem:[#allocation2 + $0x582]] }
  0x75   : > { %s2161_s3 = smul.f32 0.17677669, %s2150_s10  ;;  %s2164_s10 = sld [smem:[#allocation19_spill]] }
  0x76   : > { %s2165_s14 = sld [smem:[#allocation20_spill]] }
  0x77   : > { %2157 = sst [smem:[#allocation17_spill]] %s1300_s25  ;;  %v194_v36 = vstv %s2161_s3 }
  0x78   : > { %2162 = sst [smem:[#allocation37_spill]] %s1311_s28  ;;  %v195_v52 = vsel %vm191_vm6, %v194_v36, %v178_v45 }
  0x79   : > { %s1319_s19 = sld [smem:[#allocation2 + $0x583]]  ;;  %s2167_s20 = smul.f32 0.17677669, %s2163_s5  ;;  %v212_v60 = vsel %vm208_vm7, %v211_v53, %v195_v52 }
  0x7a   : > { %s2166_s21 = sld [smem:[#allocation9_spill]] }
  0x7b   : > { %s1322_s30 = sld [smem:[#allocation2 + $0x600]]  ;;  %v198_v47 = vstv %s2167_s20  ;;  %s2169_s17 = smul.f32 0.17677669, %s2164_s10 }
  0x7c   : > { %s2168_s22 = sld [smem:[#allocation21_spill]]  ;;  %s2171_s23 = smul.f32 0.17677669, %s2165_s14  ;;  %v199_v54 = vsel %vm191_vm6, %v198_v47, %v182_v46 }
  0x7d   : > { %s1331_s1 = sld [smem:[#allocation2 + $0x601]]  ;;  %v202_v50 = vstv %s2169_s17  ;;  %s2197_s20 = smul.f32 0.17677669, %s1224_s15 }
  0x7e   : > { %s2170_s3 = sld [smem:[#allocation22_spill]]  ;;  %v206_v51 = vstv %s2171_s23  ;;  %v203_v56 = vsel %vm191_vm6, %v202_v50, %v186_v48 }
  0x7f   : > { %s2172_s4 = sld [smem:[#allocation23_spill]]  ;;  %v207_v57 = vsel %vm191_vm6, %v206_v51, %v190_v49  ;;  %v257_v11 = vstv %s2197_s20  ;;  %vm463_vm6 = vcmp.eq.s32.totalorder %v1291_v29, 19 }
  0x80   : > { %s1342_s9 = sld [smem:[#allocation2 + $0x602]]  ;;  %s2186_s28 = sand.u32 1, %s2166_s21  }
  0x81   : > { %s2173_s2 = sld [smem:[#allocation24_spill]]  ;;  %s1386_s25 = sshll.u32 %s2186_s28, 5 }
  0x82   : > { %s2175_s14 = smul.f32 0.17677669, %s2168_s22  ;;  %s2176_s23 = sld [smem:[#allocation25_spill]] }
  0x83   : > { %s1356_s5 = sld [smem:[#allocation2 + $0x603]]  ;;  %s2191_s28 = smul.f32 0.17677669, %s1215_s12 }
  0x84   : > { %v215_v55 = vstv %s2175_s14  ;;  %s2178_s24 = smul.f32 0.17677669, %s2170_s3  ;;  %s2180_s10 = sld [smem:[#allocation26_spill]] }
  0x85   : > { %s2179_s8 = smul.f32 0.17677669, %s2172_s4  ;;  %s1367_s14 = sld [smem:[#allocation2 + $0x680]]  ;;  %v216_v62 = vsel %vm208_vm7, %v215_v55, %v199_v54  ;;  %v245_v5 = vstv %s2191_s28 }
  0x86   : > { %v219_v58 = vstv %s2178_s24  ;;  %s1375_s3 = sld [smem:[#allocation2 + $0x681]] }
  0x87   : > { %v223_v59 = vstv %s2179_s8  ;;  %s2182_s17 = smul.f32 0.17677669, %s2173_s2  ;;  %s2185_s24 = sld [smem:[#allocation27_spill]]  ;;  %v220_v0 = vsel %vm208_vm7, %v219_v58, %v203_v56 }
  0x88   : > { %s2184_s4 = smul.f32 0.17677669, %s2176_s23  ;;  %s1382_s22 = sld [smem:[#allocation2 + $0x682]]  ;;  %v224_v1 = vsel %vm208_vm7, %v223_v59, %v207_v57  ;;  %vm480_vm7 = vcmp.eq.s32.totalorder %v1291_v29, 20 }
  0x89   : > { %2177 = sst [smem:[#allocation18_spill]] %s1356_s5  ;;  %v228_v61 = vstv %s2182_s17  ;;  %s2190_s23 = smul.f32 0.17677669, %s1212_s16 }
  0x8a   : > { %v232_v63 = vstv %s2184_s4  ;;  %2187 = sst [smem:[#allocation21_spill]] %s1386_s25  ;;  %s2189_s17 = smul.f32 0.17677669, %s2180_s10  ;;  %v229_v4 = vsel %vm225_vm8, %v228_v61, %v212_v60 }
  0x8b   : > { %2181 = sst [smem:[#allocation19_spill]] %s1367_s14  ;;  %v240_v3 = vstv %s2190_s23  ;;  %v233_v6 = vsel %vm225_vm8, %v232_v63, %v216_v62  ;;  %v246_v12 = vsel %vm242_vm9, %v245_v5, %v229_v4  ;;  %s2204_s25 = smul.f32 0.17677669, %s1236_s18 }
  0x8c   : > { %2183 = sst [smem:[#allocation20_spill]] %s1375_s3  ;;  %v236_v2 = vstv %s2189_s17  ;;  %v241_v9 = vsel %vm225_vm8, %v240_v3, %v224_v1 }
  0x8d   : > { %s2188_s2 = sld [smem:[#allocation28_spill]]  ;;  %s2193_s10 = smul.f32 0.17677669, %s2185_s24  ;;  %v237_v8 = vsel %vm225_vm8, %v236_v2, %v220_v0  ;;  %v258_v17 = vsel %vm242_vm9, %v257_v11, %v241_v9  ;;  %v274_v19 = vstv %s2204_s25  ;;  %vm497_vm8 = vcmp.eq.s32.totalorder %v1291_v29, 21 }
  0x8e   : > { %s2192_s8 = sld [smem:[#allocation29_spill]]  ;;  %v275_v25 = vsel %vm259_vm10, %v274_v19, %v258_v17 }
  0x8f   : > { %s1403_s21 = sld [smem:[#allocation2 + $0x683]]  ;;  %v249_v7 = vstv %s2193_s10 }
  0x90   : > { %s2194_s16 = sld [smem:[#allocation30_spill]]  ;;  %v250_v14 = vsel %vm242_vm9, %v249_v7, %v233_v6 }
  0x91   : > { %s1410_s23 = sld [smem:[#allocation2 + $0x700]] }
  0x92   : > { %s2196_s28 = sld [smem:[#allocation31_spill]] }
  0x93   : > { %s2195_s12 = smul.f32 0.17677669, %s2188_s2  ;;  %s1421_s4 = sld [smem:[#allocation2 + $0x701]] }
  0x94   : > { %s2198_s10 = smul.f32 0.17677669, %s2192_s8  ;;  %s2199_s17 = sld [smem:[#allocation32_spill]] }
  0x95   : > { %v253_v10 = vstv %s2195_s12  ;;  %s1429_s2 = sld [smem:[#allocation2 + $0x702]] }
  0x96   : > { %v262_v13 = vstv %s2198_s10  ;;  %s2200_s15 = smul.f32 0.17677669, %s2194_s16  ;;  %s2201_s20 = sld [smem:[#allocation33_spill]]  ;;  %v254_v16 = vsel %vm242_vm9, %v253_v10, %v237_v8  ;;  %vm514_vm9 = vcmp.eq.s32.totalorder %v1291_v29, 22 }
  0x97   : > { %s1436_s24 = sld [smem:[#allocation2 + $0x703]]  ;;  %v263_v20 = vsel %vm259_vm10, %v262_v13, %v246_v12 }
  0x98   : > { %v266_v15 = vstv %s2200_s15  ;;  %s2202_s8 = smul.f32 0.17677669, %s2196_s28  ;;  %s2203_s10 = sld [smem:[#allocation34_spill]] }
  0x99   : > { %s2205_s14 = sld [smem:[#allocation35_spill]]  ;;  %v267_v22 = vsel %vm259_vm10, %v266_v15, %v250_v14 }
  0x9a   : > { %v270_v18 = vstv %s2202_s8  ;;  %s1447_s5 = sld [smem:[#allocation2 + $0x780]]  ;;  %s2206_s15 = smul.f32 0.17677669, %s2199_s17 }
  0x9b   : > { %s2207_s12 = sld [smem:[#allocation36_spill]]  ;;  %v271_v24 = vsel %vm259_vm10, %v270_v18, %v254_v16  ;;  %vm531_vm10 = vcmp.eq.s32.totalorder %v1291_v29, 23 }
  0x9c   : > { %v279_v21 = vstv %s2206_s15  ;;  %s1455_s28 = sld [smem:[#allocation2 + $0x781]]  ;;  %s2208_s18 = smul.f32 0.17677669, %s2201_s20 }
  0x9d   : > { %s1462_s8 = sld [smem:[#allocation2 + $0x782]]  ;;  %v280_v28 = vsel %vm276_vm11, %v279_v21, %v263_v20 }
  0x9e   : > { %v283_v23 = vstv %s2208_s18  ;;  %s2209_s17 = smul.f32 0.17677669, %s2203_s10  ;;  %s1473_s3 = sld [smem:[#allocation2 + $0x783]] }
  0x9f   : > { %s2210_s15 = smul.f32 0.17677669, %s2205_s14  ;;  %s1481_s10 = sld [smem:[#allocation2 + $0x800]]  ;;  %v284_v31 = vsel %vm276_vm11, %v283_v23, %v267_v22 }
  0xa0   : > { %v287_v26 = vstv %s2209_s17  ;;  %s2212_s14 = smul.f32 0.17677669, %s1255_s13  ;;  %s1499_s25 = sld [smem:[#allocation2 + $0x802]] }
  0xa1   : > { %v291_v27 = vstv %s2210_s15  ;;  %s2211_s18 = smul.f32 0.17677669, %s2207_s12  ;;  %s1488_s15 = sld [smem:[#allocation2 + $0x801]]  ;;  %v288_v33 = vsel %vm276_vm11, %v287_v26, %v271_v24 }
  0xa2   : > { %v300_v32 = vstv %s2212_s14  ;;  %v292_v34 = vsel %vm276_vm11, %v291_v27, %v275_v25  ;;  %s2213_s12 = smul.f32 0.17677669, %s1258_s0  ;;  %s2216_s17 = sld [smem:[#allocation17_spill]]  ;;  %vm548_vm11 = vcmp.eq.s32.totalorder %v1291_v29, 24 }
  0xa3   : > { %v296_v30 = vstv %s2211_s18  ;;  %s2214_s18 = smul.f32 0.17677669, %s1261_s27  ;;  %s1507_s0 = sld [smem:[#allocation2 + $0x803]]  ;;  %v301_v39 = vsel %vm293_vm12, %v300_v32, %v284_v31 }
  0xa4   : > { %v304_v35 = vstv %s2213_s12  ;;  %v297_v37 = vsel %vm293_vm12, %v296_v30, %v280_v28  ;;  %s2215_s14 = smul.f32 0.17677669, %s1267_s26  ;;  %s2218_s12 = sld [smem:[#allocation37_spill]] }
  0xa5   : > { %v308_v36 = vstv %s2214_s18  ;;  %s2217_s27 = smul.f32 0.17677669, %s1270_s7  ;;  %s1514_s13 = sld [smem:[#allocation2 + $0x880]]  ;;  %v305_v41 = vsel %vm293_vm12, %v304_v35, %v288_v33 }
  0xa6   : > { %v313_v38 = vstv %s2215_s14  ;;  %v309_v42 = vsel %vm293_vm12, %v308_v36, %v292_v34  ;;  %s2219_s26 = smul.f32 0.17677669, %s1279_s6  ;;  %s1525_s20 = sld [smem:[#allocation2 + $0x881]]  ;;  %vm565_vm12 = vcmp.eq.s32.totalorder %v1291_v29, 25 }
  0xa7   : > { %v317_v40 = vstv %s2217_s27  ;;  %s2220_s14 = smul.f32 0.17677669, %s1289_s29  ;;  %v314_v45 = vsel %vm310_vm13, %v313_v38, %v297_v37  ;;  %s1533_s6 = sld [smem:[#allocation2 + $0x882]] }
  0xa8   : > { %v321_v43 = vstv %s2219_s26  ;;  %s2221_s27 = smul.f32 0.17677669, %s2216_s17  ;;  %v318_v47 = vsel %vm310_vm13, %v317_v40, %v301_v39  ;;  %s2225_s18 = sld [smem:[#allocation18_spill]] }
  0xa9   : > { %v325_v44 = vstv %s2220_s14  ;;  %s1540_s14 = sld [smem:[#allocation2 + $0x883]]  ;;  %v322_v49 = vsel %vm310_vm13, %v321_v43, %v305_v41  ;;  %s2223_s17 = smul.f32 0.17677669, %s1317_s11 }
  0xaa   : > { %v330_v46 = vstv %s2221_s27  ;;  %s2222_s29 = smul.f32 0.17677669, %s2218_s12  ;;  %v326_v50 = vsel %vm310_vm13, %v325_v44, %v309_v42  ;;  %s1551_s7 = sld [smem:[#allocation2 + $0x900]]  ;;  %vm582_vm13 = vcmp.eq.s32.totalorder %v1291_v29, 26 }
  0xab   : > { %v338_v51 = vstv %s2223_s17  ;;  %s2224_s27 = smul.f32 0.17677669, %s1319_s19  ;;  %v331_v53 = vsel %vm327_vm14, %v330_v46, %v314_v45  ;;  %s2227_s26 = sld [smem:[#allocation19_spill]] }
  0xac   : > { %v334_v48 = vstv %s2222_s29  ;;  %s2226_s29 = smul.f32 0.17677669, %s1322_s30  ;;  %s1559_s11 = sld [smem:[#allocation2 + $0x901]]  ;;  %v339_v57 = vsel %vm327_vm14, %v338_v51, %v322_v49 }
  0xad   : > { %v342_v52 = vstv %s2224_s27  ;;  %v335_v55 = vsel %vm327_vm14, %v334_v48, %v318_v47  ;;  %s2228_s19 = smul.f32 0.17677669, %s1331_s1  ;;  %s2229_s17 = sld [smem:[#allocation20_spill]] }
  0xae   : > { %v347_v54 = vstv %s2226_s29  ;;  %s1566_s12 = sld [smem:[#allocation2 + $0x902]]  ;;  %v343_v58 = vsel %vm327_vm14, %v342_v52, %v326_v50  ;;  %s2230_s30 = smul.f32 0.17677669, %s1342_s9  ;;  %vm599_vm14 = vcmp.eq.s32.totalorder %v1291_v29, 27 }
  0xaf   : > { %v351_v56 = vstv %s2228_s19  ;;  %s2231_s29 = smul.f32 0.17677669, %s2225_s18  ;;  %s1577_s16 = sld [smem:[#allocation2 + $0x903]]  ;;  %v348_v61 = vsel %vm344_vm15, %v347_v54, %v331_v53 }
  0xb0   : > { %v355_v59 = vstv %s2230_s30  ;;  %s435_s1 = smul.f32 0.17677669, %s1525_s20  ;;  %s1585_s9 = sld [smem:[#allocation2 + $0x980]]  ;;  %v352_v63 = vsel %vm344_vm15, %v351_v56, %v335_v55 }
  0xb1   : > { %v359_v60 = vstv %s2231_s29  ;;  %s2232_s19 = smul.f32 0.17677669, %s2227_s26  ;;  %s1592_s29 = sld [smem:[#allocation2 + $0x981]]  ;;  %v356_v1 = vsel %vm344_vm15, %v355_v59, %v339_v57 }
  0xb2   : > { %v360_v2 = vsel %vm344_vm15, %v359_v60, %v343_v58  ;;  %s2234_s26 = smul.f32 0.17677669, %s1382_s22  ;;  %s1611_s22 = sld [smem:[#allocation2 + $0x983]]  ;;  %v436_v33 = vstv %s435_s1  ;;  %vm616_vm15 = vcmp.eq.s32.totalorder %v1291_v29, 28 }
  0xb3   : > { %v364_v62 = vstv %s2232_s19  ;;  %s2233_s18 = smul.f32 0.17677669, %s2229_s17  ;;  %s1603_s17 = sld [smem:[#allocation2 + $0x982]] }
  0xb4   : > { %v372_v3 = vstv %s2234_s26  ;;  %s2235_s19 = smul.f32 0.17677669, %s1403_s21  ;;  %v365_v5 = vsel %vm361_vm0, %v364_v62, %v348_v61  ;;  %s1627_s30 = sld [smem:[#allocation2 + $0xa01]] }
  0xb5   : > { %v368_v0 = vstv %s2233_s18  ;;  %s2236_s18 = smul.f32 0.17677669, %s1410_s23  ;;  %v373_v9 = vsel %vm361_vm0, %v372_v3, %v356_v1  ;;  %s1637_s27 = sld [smem:[#allocation2 + $0xa02]] }
  0xb6   : > { %v376_v4 = vstv %s2235_s19  ;;  %v369_v7 = vsel %vm361_vm0, %v368_v0, %v352_v63  ;;  %s2237_s21 = smul.f32 0.17677669, %s1421_s4  ;;  %s1618_s19 = sld [smem:[#allocation2 + $0xa00]] }
  0xb7   : > { %v381_v6 = vstv %s2236_s18  ;;  %v377_v10 = vsel %vm361_vm0, %v376_v4, %v360_v2  ;;  %s2238_s23 = smul.f32 0.17677669, %s1429_s2  ;;  %s1670_s26 = sld [smem:[#allocation2 + $0xa82]]  ;;  %vm633_vm0 = vcmp.eq.s32.totalorder %v1291_v29, 29 }
  0xb8   : > { %v385_v8 = vstv %s2237_s21  ;;  %s460_s18 = smul.f32 0.17677669, %s1577_s16  ;;  %v382_v12 = vsel %vm378_vm1, %v381_v6, %v365_v5 }
  0xb9   : > { %v389_v11 = vstv %s2238_s23  ;;  %s2239_s4 = smul.f32 0.17677669, %s1436_s24  ;;  %v386_v15 = vsel %vm378_vm1, %v385_v8, %v369_v7  ;;  %s1644_s24 = sld [smem:[#allocation2 + $0xa03]] }
  0xba   : > { %s2240_s21 = smul.f32 0.17677669, %s1447_s5  ;;  %v390_v17 = vsel %vm378_vm1, %v389_v11, %v373_v9  ;;  %v461_v46 = vstv %s460_s18  ;;  %s1756_s18 = sld [smem:[#allocation2 + $0xc00]] }
  0xbb   : > { %v393_v13 = vstv %s2239_s4  ;;  %s2241_s2 = smul.f32 0.17677669, %s1455_s28 }
  0xbc   : > { %v398_v14 = vstv %s2240_s21  ;;  %s2242_s5 = smul.f32 0.17677669, %s1462_s8  ;;  %s1652_s21 = sld [smem:[#allocation2 + $0xa80]]  ;;  %v394_v19 = vsel %vm378_vm1, %v393_v13, %v377_v10  ;;  %vm650_vm1 = vcmp.eq.s32.totalorder %v1291_v29, 30 }
  0xbd   : > { %v402_v16 = vstv %s2241_s2  ;;  %v399_v20 = vsel %vm395_vm2, %v398_v14, %v382_v12  ;;  %s2243_s28 = smul.f32 0.17677669, %s1473_s3 }
  0xbe   : > { %v406_v18 = vstv %s2242_s5  ;;  %s2244_s2 = smul.f32 0.17677669, %s1481_s10  ;;  %s1663_s5 = sld [smem:[#allocation2 + $0xa81]]  ;;  %v403_v23 = vsel %vm395_vm2, %v402_v16, %v386_v15 }
  0xbf   : > { %v410_v21 = vstv %s2243_s28  ;;  %s477_s8 = smul.f32 0.17677669, %s1611_s22  ;;  %v407_v25 = vsel %vm395_vm2, %v406_v18, %v390_v17  ;;  %s1678_s28 = sld [smem:[#allocation2 + $0xa83]] }
  0xc0   : > { %v415_v22 = vstv %s2244_s2  ;;  %s2245_s4 = smul.f32 0.17677669, %s1488_s15  ;;  %v411_v27 = vsel %vm395_vm2, %v410_v21, %v394_v19  ;;  %s1689_s2 = sld [smem:[#allocation2 + $0xb00]]  ;;  %vm667_vm2 = vcmp.eq.s32.totalorder %v1291_v29, 31 }
  0xc1   : > { %s482_s23 = smul.f32 0.17677669, %s1618_s19  ;;  %v416_v28 = vsel %vm412_vm3, %v415_v22, %v399_v20  ;;  %s1696_s10 = sld [smem:[#allocation2 + $0xb01]]  ;;  %v478_v54 = vstv %s477_s8 }
  0xc2   : > { %v419_v24 = vstv %s2245_s4  ;;  %s2246_s3 = smul.f32 0.17677669, %s1499_s25  ;;  %s1782_s19 = sld [smem:[#allocation2 + $0xc03]] }
  0xc3   : > { %s2247_s15 = smul.f32 0.17677669, %s1507_s0  ;;  %v420_v32 = vsel %vm412_vm3, %v419_v24, %v403_v23  ;;  %v483_v55 = vstv %s482_s23  ;;  %s1793_s8 = sld [smem:[#allocation2 + $0xc80]] }
  0xc4   : > { %v423_v26 = vstv %s2246_s3  ;;  %s2248_s4 = smul.f32 0.17677669, %s1514_s13  ;;  %v437_v40 = vsel %vm429_vm4, %v436_v33, %v420_v32  ;;  %s1722_s3 = sld [smem:[#allocation2 + $0xb80]] }
  0xc5   : > { %v427_v30 = vstv %s2247_s15  ;;  %s490_s25 = smul.f32 0.17677669, %s1637_s27  ;;  %v424_v34 = vsel %vm412_vm3, %v423_v26, %v407_v25  ;;  %s1704_s15 = sld [smem:[#allocation2 + $0xb02]] }
  0xc6   : > { %v432_v31 = vstv %s2248_s4  ;;  %s2249_s13 = smul.f32 0.17677669, %s1533_s6  ;;  %v428_v36 = vsel %vm412_vm3, %v427_v30, %v411_v27  ;;  %s1715_s4 = sld [smem:[#allocation2 + $0xb03]]  ;;  %vm684_vm3 = vcmask 130048  }
  0xc7   : > { %v433_v37 = vsel %vm429_vm4, %v432_v31, %v416_v28  ;;  %s2250_s20 = smul.f32 0.17677669, %s1540_s14  ;;  %s1748_s14 = sld [smem:[#allocation2 + $0xb83]]  ;;  %v491_v59 = vstv %s490_s25 }
  0xc8   : > { %v440_v35 = vstv %s2249_s13  ;;  %s2251_s1 = smul.f32 0.17677669, %s1551_s7 }
  0xc9   : > { %v444_v38 = vstv %s2250_s20  ;;  %s503_s6 = smul.f32 0.17677669, %s1663_s5  ;;  %v441_v42 = vsel %vm429_vm4, %v440_v35, %v424_v34  ;;  %s1730_s20 = sld [smem:[#allocation2 + $0xb81]] }
  0xca   : > { %v449_v39 = vstv %s2251_s1  ;;  %s2252_s13 = smul.f32 0.17677669, %s1559_s11  ;;  %v445_v44 = vsel %vm429_vm4, %v444_v38, %v428_v36  ;;  %s1741_s1 = sld [smem:[#allocation2 + $0xb82]] }
  0xcb   : > { %s507_s0 = smul.f32 0.17677669, %s1670_s26  ;;  %v450_v45 = vsel %vm446_vm5, %v449_v39, %v433_v37  ;;  %v462_v52 = vsel %vm446_vm5, %v461_v46, %v445_v44  ;;  %v504_v1 = vstv %s503_s6 }
  0xcc   : > { %v453_v41 = vstv %s2252_s13  ;;  %s2253_s7 = smul.f32 0.17677669, %s1566_s12  ;;  %v479_v60 = vsel %vm463_vm6, %v478_v54, %v462_v52 }
  0xcd   : > { %s2254_s11 = smul.f32 0.17677669, %s1585_s9  ;;  %v454_v48 = vsel %vm446_vm5, %v453_v41, %v437_v40  ;;  %v508_v3 = vstv %s507_s0  ;;  %s1819_s0 = sld [smem:[#allocation2 + $0xc83]] }
  0xce   : > { %v457_v43 = vstv %s2253_s7  ;;  %s516_s12 = smul.f32 0.17677669, %s1689_s2  ;;  %s1834_s2 = sld [smem:[#allocation2 + $0xd01]] }
  0xcf   : > { %v466_v47 = vstv %s2254_s11  ;;  %s2255_s13 = smul.f32 0.17677669, %s1592_s29  ;;  %v458_v50 = vsel %vm446_vm5, %v457_v43, %v441_v42 }
  0xd0   : > { %s520_s7 = smul.f32 0.17677669, %s1696_s10  ;;  %v467_v53 = vsel %vm463_vm6, %v466_v47, %v450_v45  ;;  %v517_v7 = vstv %s516_s12 }
  0xd1   : > { %v470_v49 = vstv %s2255_s13  ;;  %s2256_s16 = smul.f32 0.17677669, %s1603_s17  ;;  %s1767_s17 = sld [smem:[#allocation2 + $0xc01]]  ;;  %v484_v61 = vsel %vm480_vm7, %v483_v55, %v467_v53 }
  0xd2   : > { %s524_s9 = smul.f32 0.17677669, %s1704_s15  ;;  %v471_v56 = vsel %vm463_vm6, %v470_v49, %v454_v48  ;;  %v521_v9 = vstv %s520_s7  ;;  %s1845_s15 = sld [smem:[#allocation2 + $0xd02]] }
  0xd3   : > { %v474_v51 = vstv %s2256_s16  ;;  %s528_s29 = smul.f32 0.17677669, %s1715_s4  ;;  %s1774_s16 = sld [smem:[#allocation2 + $0xc02]] }
  0xd4   : > { %s2257_s11 = smul.f32 0.17677669, %s1627_s30  ;;  %v475_v58 = vsel %vm463_vm6, %v474_v51, %v458_v50  ;;  %v525_v11 = vstv %s524_s9  ;;  %s1852_s7 = sld [smem:[#allocation2 + $0xd03]] }
  0xd5   : > { %s533_s13 = smul.f32 0.17677669, %s1722_s3  ;;  %v492_v2 = vsel %vm480_vm7, %v491_v59, %v475_v58  ;;  %v529_v14 = vstv %s528_s29  ;;  %s1860_s4 = sld [smem:[#allocation2 + $0xd80]] }
  0xd6   : > { %v487_v57 = vstv %s2257_s11  ;;  %s537_s22 = smul.f32 0.17677669, %s1730_s20  ;;  %s1800_s11 = sld [smem:[#allocation2 + $0xc81]]  ;;  %v509_v10 = vsel %vm497_vm8, %v508_v3, %v492_v2 }
  0xd7   : > { %s2258_s30 = smul.f32 0.17677669, %s1644_s24  ;;  %v488_v0 = vsel %vm480_vm7, %v487_v57, %v471_v56  ;;  %v534_v15 = vstv %s533_s13  ;;  %v526_v18 = vsel %vm514_vm9, %v525_v11, %v509_v10  ;;  %s1878_s29 = sld [smem:[#allocation2 + $0xd82]] }
  0xd8   : > { %s2259_s23 = smul.f32 0.17677669, %s1652_s21  ;;  %s1808_s21 = sld [smem:[#allocation2 + $0xc82]]  ;;  %v505_v8 = vsel %vm497_vm8, %v504_v1, %v488_v0  ;;  %v538_v17 = vstv %s537_s22 }
  0xd9   : > { %v495_v62 = vstv %s2258_s30  ;;  %s541_s27 = smul.f32 0.17677669, %s1741_s1  ;;  %s1826_s30 = sld [smem:[#allocation2 + $0xd00]]  ;;  %v522_v16 = vsel %vm514_vm9, %v521_v9, %v505_v8 }
  0xda   : > { %v500_v63 = vstv %s2259_s23  ;;  %s545_s25 = smul.f32 0.17677669, %s1748_s14  ;;  %v496_v4 = vsel %vm480_vm7, %v495_v62, %v479_v60  ;;  %s1871_s1 = sld [smem:[#allocation2 + $0xd81]]  ;;  %v539_v24 = vsel %vm531_vm10, %v538_v17, %v522_v16 }
  0xdb   : > { %s550_s24 = smul.f32 0.17677669, %s1756_s18  ;;  %v501_v5 = vsel %vm497_vm8, %v500_v63, %v484_v61  ;;  %v542_v19 = vstv %s541_s27  ;;  %s1886_s18 = sld [smem:[#allocation2 + $0xd83]] }
  0xdc   : > { %s2260_s5 = smul.f32 0.17677669, %s1678_s28  ;;  %v518_v13 = vsel %vm514_vm9, %v517_v7, %v501_v5  ;;  %v546_v22 = vstv %s545_s25  ;;  %v543_v26 = vsel %vm531_vm10, %v542_v19, %v526_v18  ;;  %s1895_s13 = sld [smem:[#allocation2 + $0xe00]] }
  0xdd   : > { %s554_s26 = smul.f32 0.17677669, %s1767_s17  ;;  %v535_v21 = vsel %vm531_vm10, %v534_v15, %v518_v13  ;;  %v551_v23 = vstv %s550_s24  ;;  %s1900_s22 = sld [smem:[#allocation2 + $0xe01]] }
  0xde   : > { %v512_v6 = vstv %s2260_s5  ;;  %s558_s6 = smul.f32 0.17677669, %s1774_s16  ;;  %v552_v30 = vsel %vm548_vm11, %v551_v23, %v535_v21  ;;  %s1906_s23 = sld [smem:[#allocation2 + $0xe02]] }
  0xdf   : > { %s562_s28 = smul.f32 0.17677669, %s1782_s19  ;;  %v513_v12 = vsel %vm497_vm8, %v512_v6, %v496_v4  ;;  %v555_v25 = vstv %s554_s26  ;;  %s1931_s26 = sld [smem:[#allocation2 + $0xe82]] }
  0xe0   : > { %s567_s10 = smul.f32 0.17677669, %s1793_s8  ;;  %v530_v20 = vsel %vm514_vm9, %v529_v14, %v513_v12  ;;  %v559_v27 = vstv %s558_s6  ;;  %v556_v33 = vsel %vm548_vm11, %v555_v25, %v539_v24  ;;  %s1913_s8 = sld [smem:[#allocation2 + $0xe03]] }
  0xe1   : > { %s571_s12 = smul.f32 0.17677669, %s1800_s11  ;;  %v547_v28 = vsel %vm531_vm10, %v546_v22, %v530_v20  ;;  %v563_v31 = vstv %s562_s28  ;;  %v560_v35 = vsel %vm548_vm11, %v559_v27, %v543_v26  ;;  %s1918_s11 = sld [smem:[#allocation2 + $0xe80]] }
  0xe2   : > { %s575_s3 = smul.f32 0.17677669, %s1808_s21  ;;  %v568_v32 = vstv %s567_s10  ;;  %v564_v37 = vsel %vm548_vm11, %v563_v31, %v547_v28  ;;  %s1924_s21 = sld [smem:[#allocation2 + $0xe81]] }
  0xe3   : > { %s579_s20 = smul.f32 0.17677669, %s1819_s0  ;;  %v572_v34 = vstv %s571_s12  ;;  %v569_v38 = vsel %vm565_vm12, %v568_v32, %v552_v30  ;;  %s1936_s6 = sld [smem:[#allocation2 + $0xe83]] }
  0xe4   : > { %s584_s9 = smul.f32 0.17677669, %s1826_s30  ;;  %v576_v36 = vstv %s575_s3  ;;  %v573_v41 = vsel %vm565_vm12, %v572_v34, %v556_v33  ;;  %s1942_s28 = sld [smem:[#allocation2 + $0xf00]] }
  0xe5   : > { %s588_s14 = smul.f32 0.17677669, %s1834_s2  ;;  %v580_v39 = vstv %s579_s20  ;;  %v577_v43 = vsel %vm565_vm12, %v576_v36, %v560_v35  ;;  %s1949_s10 = sld [smem:[#allocation2 + $0xf01]] }
  0xe6   : > { %s592_s17 = smul.f32 0.17677669, %s1845_s15  ;;  %v585_v40 = vstv %s584_s9  ;;  %v581_v45 = vsel %vm565_vm12, %v580_v39, %v564_v37  ;;  %s1954_s12 = sld [smem:[#allocation2 + $0xf02]] }
  0xe7   : > { %s596_s16 = smul.f32 0.17677669, %s1852_s7  ;;  %v589_v42 = vstv %s588_s14  ;;  %v586_v46 = vsel %vm582_vm13, %v585_v40, %v569_v38  ;;  %s1960_s3 = sld [smem:[#allocation2 + $0xf03]] }
  0xe8   : > { %s601_s19 = smul.f32 0.17677669, %s1860_s4  ;;  %v593_v44 = vstv %s592_s17  ;;  %v590_v49 = vsel %vm582_vm13, %v589_v42, %v573_v41  ;;  %s1967_s20 = sld [smem:[#allocation2 + $0xf80]] }
  0xe9   : > { %s605_s27 = smul.f32 0.17677669, %s1871_s1  ;;  %v597_v47 = vstv %s596_s16  ;;  %v594_v51 = vsel %vm582_vm13, %v593_v44, %v577_v43  ;;  %s1972_s9 = sld [smem:[#allocation2 + $0xf81]] }
  0xea   : > { %s609_s25 = smul.f32 0.17677669, %s1878_s29  ;;  %v602_v48 = vstv %s601_s19  ;;  %v598_v53 = vsel %vm582_vm13, %v597_v47, %v581_v45  ;;  %s1977_s14 = sld [smem:[#allocation2 + $0xf82]] }
  0xeb   : > { %s613_s24 = smul.f32 0.17677669, %s1886_s18  ;;  %v606_v50 = vstv %s605_s27  ;;  %v603_v54 = vsel %vm599_vm14, %v602_v48, %v586_v46  ;;  %s2261_s18 = sld [smem:[#allocation12_spill]] }
  0xec   : > { %s618_s5 = smul.f32 0.17677669, %s1895_s13  ;;  %v610_v52 = vstv %s609_s25  ;;  %v607_v57 = vsel %vm599_vm14, %v606_v50, %v590_v49  ;;  %s1985_s13 = sld [smem:[#allocation2 + $0xf83]] }
  0xed   : > { %s622_s0 = smul.f32 0.17677669, %s1900_s22  ;;  %v614_v55 = vstv %s613_s24  ;;  %v611_v59 = vsel %vm599_vm14, %v610_v52, %v594_v51  ;;  %s2262_s16 = sld [smem:[#allocation21_spill]] }
  0xee   : > { %s626_s30 = smul.f32 0.17677669, %s1906_s23  ;;  %v619_v56 = vstv %s618_s5  ;;  %v615_v61 = vsel %vm599_vm14, %v614_v55, %v598_v53 }
  0xef   : > { %s630_s2 = smul.f32 0.17677669, %s1913_s8  ;;  %v623_v58 = vstv %s622_s0  ;;  %v620_v62 = vsel %vm616_vm15, %v619_v56, %v603_v54 }
  0xf0   : > { %s635_s15 = smul.f32 0.17677669, %s1918_s11  ;;  %v627_v60 = vstv %s626_s30  ;;  %v624_v1 = vsel %vm616_vm15, %v623_v58, %v607_v57  ;;  %s2265_s30 = sld [smem:[#allocation39_spill]] }
  0xf1   : > { %s639_s7 = smul.f32 0.17677669, %s1924_s21  ;;  %v631_v63 = vstv %s630_s2  ;;  %v628_v3 = vsel %vm616_vm15, %v627_v60, %v611_v59  ;;  %s906_s27 = sshll.u32 %s2261_s18, 7 }
  0xf2   : > { %v636_v0 = vstv %s635_s15  ;;  %s643_s4 = smul.f32 0.17677669, %s1931_s26  ;;  %v632_v5 = vsel %vm616_vm15, %v631_v63, %v615_v61  ;;  %s2263_s21 = sld [smem:[#allocation9_spill]] }
  0xf3   : > { %v640_v2 = vstv %s639_s7  ;;  %s647_s1 = smul.f32 0.17677669, %s1936_s6  ;;  %v637_v6 = vsel %vm633_vm0, %v636_v0, %v620_v62  ;;  %s110_s25 = scalar_lea.vmem [#allocation5], %s2262_s16 }
  0xf4   : > { %v644_v4 = vstv %s643_s4  ;;  %s652_s29 = smul.f32 0.17677669, %s1942_s28  ;;  %v641_v8 = vsel %vm633_vm0, %v640_v2, %v624_v1  ;;  %s705_s11 = sshll.u32 %s110_s25, 4  ;;  %s2020_s11 = int_to_ptr.vmem [resolvable:$true] %s705_s11 }
  0xf5   : > { %v648_v7 = vstv %s647_s1  ;;  %s656_s17 = smul.f32 0.17677669, %s1949_s10  ;;  %v645_v10 = vsel %vm633_vm0, %v644_v4, %v628_v3  ;;  %s984_s15 = scalar_lea.vmem %s2020_s11, 512 }
  0xf6   : > { %v653_v9 = vstv %s652_s29  ;;  %s660_s22 = smul.f32 0.17677669, %s1954_s12  ;;  %v649_v12 = vsel %vm633_vm0, %v648_v7, %v632_v5  ;;  %s2015_s28 = scalar_lea.hbm %s2265_s30, %s906_s27 }
  0xf7   : > { %v657_v11 = vstv %s656_s17  ;;  %s664_s19 = smul.f32 0.17677669, %s1960_s3  ;;  %v654_v13 = vsel %vm650_vm1, %v653_v9, %v637_v6  ;;  %p985_p9 = scmp.ne.s32.totalorder %s2020_s11, %s984_s15 }
  0xf8   : > { %v661_v14 = vstv %s660_s22  ;;  %s669_s23 = smul.f32 0.17677669, %s1967_s20  ;;  %v658_v15 = vsel %vm650_vm1, %v657_v11, %v641_v8  ;;  %s2266_s2 = sand.u32 1, %s2263_s21  }
  0xf9   : > { %v665_v16 = vstv %s664_s19  ;;  %s673_s8 = smul.f32 0.17677669, %s1972_s9  ;;  %v662_v17 = vsel %vm650_vm1, %v661_v14, %v645_v10  ;;  %s2031_s10 = scalar_lea.sflag [#allocation3], %s2266_s2 }
  0xfa   : > { %v670_v18 = vstv %s669_s23  ;;  %s677_s24 = smul.f32 0.17677669, %s1977_s14  ;;  %v666_v19 = vsel %vm650_vm1, %v665_v16, %v649_v12  ;;  %p986_p10 = pnand %p985_p9, %p1106_p5 }
  0xfb   : > { %v671_v20 = vsel %vm667_vm2, %v670_v18, %v654_v13  ;;  %v674_v21 = vstv %s673_s8  ;;  %s681_s26 = smul.f32 0.17677669, %s1985_s13  ;;  %s1054_s12 = smov [#allocation5]  }
  0xfc   : > { %v675_v22 = vsel %vm667_vm2, %v674_v21, %v658_v15  ;;  %v678_v23 = vstv %s677_s24  ;;  %685 = vst.msk [vmem:[%s110_s25] sm:$0xff] %vm684_vm3, %v671_v20  ;;  %p987_p11 = pneg %p986_p10  ;;  %s988_s7 = sshll.u32 %s1054_s12, 4  ;;  %s989_s7 = int_to_ptr.vmem [resolvable:$false] %s988_s7 }
  0xfd   : > { %v679_v24 = vsel %vm667_vm2, %v678_v23, %v662_v17  ;;  %v682_v25 = vstv %s681_s26  ;;  %902 = vst.msk [vmem:[%s110_s25 + $0x8] sm:$0xff] %vm684_vm3, %v675_v22  ;;  %s990_s3 = scalar_lea.vmem %s989_s7, 1024  ;;  %p991_p12 = scmp.lt.s32.totalorder %s2020_s11, %s989_s7 }
  0xfe   : > { %v683_v26 = vsel %vm667_vm2, %v682_v25, %v666_v19  ;;  %903 = vst.msk [vmem:[%s110_s25 + $0x10] sm:$0xff] %vm684_vm3, %v679_v24  ;;  %p992_p13 = scmp.lt.s32.totalorder %s990_s3, %s984_s15 }
  0xff   : > { %904 = vst.msk [vmem:[%s110_s25 + $0x18] sm:$0xff] %vm684_vm3, %v683_v26 }
 0x100   : > { %p993_p0 = por %p992_p13, %p991_p12 }
 0x102   : > { %p994_p1 = pnand %p993_p0, %p987_p11 }
 0x104   : > { %997 = shalt.err (!%p994_p1)
}
 0x105   : > { %s998_s4 = scalar_lea.hbm %s2015_s28, 512  ;;  %s1002_s9 = scalar_lea.hbm %s2265_s30, 1024 }
 0x106   : > { %p999_p2 = scmp.ne.s32.totalorder %s2015_s28, %s998_s4  ;;  %p1003_p7 = scmp.lt.s32.totalorder %s2015_s28, %s2265_s30 }
 0x107   : > { %p1004_p8 = scmp.lt.s32.totalorder %s1002_s9, %s998_s4 }
 0x108   : > { %p1000_p3 = pnand %p999_p2, %p1106_p5 }
 0x109   : > { %p1005_p9 = por %p1004_p8, %p1003_p7 }
 0x10a   : > { %p1001_p4 = pneg %p1000_p3 }
 0x10c   : > { %p1006_p10 = pnand %p1005_p9, %p1001_p4 }
 0x10e   : > { %1009 = shalt.err (!%p1006_p10)
}
 0x10f   : > { %s1055_s18 = smov 128   ;;  %s1056_s17 = smov 256  }
 0x110   : > { %s1057_s13 = smov 8  }
 0x111   : > { %915 = dma.vmem_to_hbm [thread:$0]  (%p1106_p5), %s2020_s11, 512, %s2015_s28, %s2031_s10, %s1055_s18, %s1056_s17, %s1057_s13  }
 0x112 PF: > { %s2267_s16 = sld [smem:[#allocation11_spill]] }
 0x113   : > { %s2268_s22 = sld [smem:[#allocation8_spill]] }
 0x118   : > { %p927_p11 = scmp.ge.s32.totalorder %s2267_s16, 2 }
 0x119   : > { %s720_s23 = sand.u32 1, %s2268_s22  }
 0x11a   : > { %p922_p12 = pnand %p927_p11, %p1110_p6  ;;  %s721_s27 = scalar_lea.sflag [#allocation3], %s720_s23 }
 0x11c   : > { %p923_p13 = pneg %p922_p12 }
 0x11e   : > { %1031 = dma.done.wait (%p923_p13), %s721_s27, 512  }
 0x11f   : > { %1033 = vsyncadd (%p923_p13), %s721_s27, 4294966784  ;;  %s2270_s9 = sld [smem:[#allocation13_spill]] }
 0x120   : > { %s2271_s6 = sld [smem:[#allocation9_spill]] }
 0x121   : > { %s2272_s7 = sld [smem:[#allocation10_spill]] }
 0x122   : > { %s2273_s8 = sld [smem:[#allocation14_spill]] }
 0x125   : > { %p12_p0 = scmp.ge.s32.totalorder %s2270_s9, 4  }
 0x127   :  { %14 = sbr.rel (!%p12_p0) target bundleno = 7 (0x7), region = 64 }
 0x12c   :  { %726 = vsyncpa [#allocation3], 1 }
 0x12d   :  { %728 = vsyncpa [#allocation3 + $0x1], 1 }
 0x12e   :  { %729 = vsyncpa [#allocation4], 1 }
 0x12f   :  { %731 = vsyncpa [#allocation4 + $0x1], 1 }

</bundles_post_ra>
